<compile_context>
chip_gen: v6e
topology: v6e:2x2x1
jax: 0.10.0
libtpu: 0.0.40
codegen_flags: <defaults>
</compile_context>

<pallas_src>
import functools

import jax
import jax.numpy as jnp
from jax.experimental import pallas as pl
from jax.experimental.pallas import tpu as pltpu


def _deres_kernel(x_ref, w1_ref, w2_ref, cmask_ref, o_ref, pbuf_ref, col_ref, *,
                  H, W, C_in, C_out, B, stride, pad):
    """Fused ReLU -> ConvT1(3x3,s1,p1) -> ReLU -> ConvT2(3x3,s,p1) for B images.

    x_ref     : (B, C_in, H*W)               flattened NCHW images
    w1_ref    : (C_in, 9*C_in)      bf16     im2col stage-1 weights (col = tap*C_in + c)
    w2_ref    : stride=1: (C_out, 9*C_in)    im2col stage-2 weights
                stride=2: (4*C_out, 4*C_in)  polyphase block weights (phase x shift)
    cmask_ref : (2, H*W) f32                 [col>0, col<W-1]
    o_ref     : (B, s*s, C_out, H*W)         one dense slab per output phase
    pbuf_ref  : (B, C_in, H*W + 2*pad) f32   zero-margined flat scratch (x, then z)
    col_ref   : (9*C_in, B*H*W) f32          stacked im2col windows (both stages)
    """
    f32, bf16 = jnp.float32, jnp.bfloat16
    HW = H * W
    PAD = pad                               # 128-aligned zero margin on each side

    lef = cmask_ref[0:1, :]                 # 1.0 where col > 0
    rig = cmask_ref[1:2, :]                 # 1.0 where col < W-1

    # Margin-only zeroing: the interior [PAD:PAD+HW] is fully overwritten below.
    # Unconditional on purpose (gating on program_id(0)==0 would break under the
    # 'parallel' grid axis).
    pbuf_ref[:, :, :PAD] = jnp.zeros((B, C_in, PAD), f32)
    pbuf_ref[:, :, PAD + HW:] = jnp.zeros((B, C_in, PAD), f32)

    # Leading ReLU folded into the kernel; 128-lane-aligned dense interior store.
    pbuf_ref[:, :, PAD:PAD + HW] = jnp.maximum(x_ref[...].astype(f32), 0.0)

    def fill_im2col(taps):
        # Materialize each lane-shifted, column-masked window exactly once into the
        # stacked im2col scratch: rows [t*C_in:(t+1)*C_in], lanes [b*HW:(b+1)*HW].
        # Row offsets are sublane-aligned whenever C_in % 8 == 0; at toy C_in=4
        # Mosaic falls back to masked sub-tile stores, which is still correct.
        for t, (shift, mask) in enumerate(taps):
            for b in range(B):
                win = pbuf_ref[b, :, PAD + shift:PAD + shift + HW]    # (C_in, HW)
                if mask is not None:
                    win = win * mask
                col_ref[t * C_in:(t + 1) * C_in, b * HW:(b + 1) * HW] = win

    def im2col_dot(w_ref_, n_rows):
        # ONE MXU matmul per stage: bf16 operands, f32 accumulation.
        return jnp.dot(w_ref_[...],
                       col_ref[0:n_rows, :].astype(bf16),
                       preferred_element_type=f32)

    # Full 3x3 tap set: shift (kh-1)*W + (kw-1); the left/right column masks kill
    # horizontal wrap, the zero margins of pbuf kill vertical wrap.
    full_taps = []
    for kh in range(3):
        for kw in range(3):
            full_taps.append(((kh - 1) * W + (kw - 1),
                              lef if kw == 0 else rig if kw == 2 else None))

    # ---- Stage 1: ConvT1 (stride 1) as one im2col matmul + middle ReLU.
    fill_im2col(full_taps)
    z = jnp.maximum(im2col_dot(w1_ref, 9 * C_in), 0.0)        # (C_in, B*HW) f32

    # Reuse the padded scratch for z (its margins are already zero).
    for b in range(B):
        pbuf_ref[b, :, PAD:PAD + HW] = z[:, b * HW:(b + 1) * HW]

    # ---- Stage 2: ConvT2 (stride s) straight from the on-chip z.
    if stride == 1:
        fill_im2col(full_taps)
        y = im2col_dot(w2_ref, 9 * C_in)                      # (C_out, B*HW)
        for b in range(B):
            o_ref[b, 0] = y[:, b * HW:(b + 1) * HW].astype(o_ref.dtype)
    else:
        # stride == 2 polyphase: for output pixel (2a+py, 2b+px) only the taps that
        # hit non-zeros of the x2-dilated z survive, and they touch just 4 distinct
        # shifted windows of z: {0, +1, +W, +W+1}.  The block weight w2_ref routes
        # each (phase, shift) pair to its single surviving 3x3 tap (zeros for the
        # rest), so ONE matmul produces all four phases at once:
        #   (even,even): (1,1)@z[a,b]
        #   (even,odd) : (1,0)@z[a,b] + (1,2)@z[a,b+1]
        #   (odd ,even): (0,1)@z[a,b] + (2,1)@z[a+1,b]
        #   (odd ,odd) : (0,0)@z[a,b] + (0,2)@z[a,b+1] + (2,0)@z[a+1,b] + (2,2)@z[a+1,b+1]
        poly_taps = [(0, None), (1, rig), (W, None), (W + 1, rig)]
        fill_im2col(poly_taps)
        y = im2col_dot(w2_ref, 4 * C_in)                      # (4*C_out, B*HW)
        for b in range(B):
            for p in range(4):
                o_ref[b, p] = y[p * C_out:(p + 1) * C_out,
                                b * HW:(b + 1) * HW].astype(o_ref.dtype)


def _wcorr(w_pt):
    """PyTorch ConvTranspose2d weight (C_src, C_dst, 3, 3) -> equivalent
    correlation weight W_corr[d, c, kh, kw] = w_pt[c, d, 2-kh, 2-kw]."""
    return jnp.transpose(jnp.flip(w_pt, axis=(2, 3)), (1, 0, 2, 3))


def _prep_full(w_pt):
    """-> (C_dst, 9*C_src): column block t = kh*3+kw holds W_corr[:, :, kh, kw]."""
    wc = jnp.transpose(_wcorr(w_pt), (0, 2, 3, 1))            # (C_dst, kh, kw, C_src)
    c_dst, _, _, c_src = wc.shape
    return wc.reshape(c_dst, 9 * c_src)


def _prep_poly2(w_pt):
    """-> (4*C_dst, 4*C_src) polyphase block weight for the stride-2 single dot.
    Row block p = phase (ee, eo, oe, oo); column block s = shift {0, +1, +W, +W+1};
    the (p, s) block holds the single surviving 3x3 tap (zeros elsewhere)."""
    wc = _wcorr(w_pt)                                         # (C_dst, C_src, 3, 3)
    c_dst, c_src = wc.shape[0], wc.shape[1]
    m = jnp.zeros((4 * c_dst, 4 * c_src), w_pt.dtype)
    placement = {(0, 0): (1, 1),
                 (1, 0): (1, 0), (1, 1): (1, 2),
                 (2, 0): (0, 1), (2, 2): (2, 1),
                 (3, 0): (0, 0), (3, 1): (0, 2), (3, 2): (2, 0), (3, 3): (2, 2)}
    for (p, s), (kh, kw) in placement.items():
        m = m.at[p * c_dst:(p + 1) * c_dst,
                 s * c_src:(s + 1) * c_src].set(wc[:, :, kh, kw])
    return m


def deresblock_forward(x_nchw, w1_pt, w2_pt, stride):
    """Matches DeResBlock.forward: relu -> ConvT(3,1,1) -> relu -> ConvT(3,s,1)."""
    if stride not in (1, 2):
        # TODO(synk): general stride needs stride**2 polyphases; ResNet decoders
        # only use stride 1 and 2, so only those are implemented.
        raise NotImplementedError("stride must be 1 or 2")
    N, C_in, H, W = x_nchw.shape
    C_out = w2_pt.shape[1]
    HW = H * W
    n_phase = stride * stride
    pad = ((W + 1 + 127) // 128) * 128       # 128-aligned scratch margin >= W+1

    # Batch B images per grid step (largest divisor of N that is <= 8).
    B = 1
    for cand in range(min(N, 8), 0, -1):
        if N % cand == 0:
            B = cand
            break

    # Host-side weight prep: pre-transposed im2col layouts, pre-cast to bf16.
    w1m = _prep_full(w1_pt).astype(jnp.bfloat16)              # (C_in, 9*C_in)
    if stride == 1:
        w2m = _prep_full(w2_pt).astype(jnp.bfloat16)          # (C_out, 9*C_in)
    else:
        w2m = _prep_poly2(w2_pt).astype(jnp.bfloat16)         # (4*C_out, 4*C_in)

    # Column-validity masks for +/-1 horizontal taps (row wrap is absorbed by the
    # zero margins of the flat scratch inside the kernel).
    col = jnp.tile(jnp.arange(W), H)
    cmask = jnp.stack([col > 0, col < W - 1]).astype(jnp.float32)   # (2, HW)

    x_flat = x_nchw.reshape(N, C_in, HW)     # NCHW -> (N, C, H*W): free reshape

    kern = functools.partial(_deres_kernel, H=H, W=W, C_in=C_in, C_out=C_out,
                             B=B, stride=stride, pad=pad)
    out = pl.pallas_call(
        kern,
        out_shape=jax.ShapeDtypeStruct((N, n_phase, C_out, HW), x_nchw.dtype),
        grid=(N // B,),
        in_specs=[
            pl.BlockSpec((B, C_in, HW), lambda n: (n, 0, 0)),
            pl.BlockSpec(w1m.shape, lambda n: (0, 0)),
            pl.BlockSpec(w2m.shape, lambda n: (0, 0)),
            pl.BlockSpec((2, HW), lambda n: (0, 0)),
        ],
        out_specs=pl.BlockSpec((B, n_phase, C_out, HW), lambda n: (n, 0, 0, 0)),
        scratch_shapes=[
            pltpu.VMEM((B, C_in, HW + 2 * pad), jnp.float32),   # padded ReLU(x) / z
            pltpu.VMEM((9 * C_in, B * HW), jnp.float32),        # stacked im2col
        ],
        compiler_params=pltpu.CompilerParams(
            dimension_semantics=("parallel",)),
    )(x_flat, w1m, w2m, cmask)

    if stride == 1:
        return out.reshape(N, C_out, H, W)
    # stride == 2: interleave the four phases and crop to ((H-1)*2+1, (W-1)*2+1).
    H_out, W_out = (H - 1) * 2 + 1, (W - 1) * 2 + 1
    o = out.reshape(N, 2, 2, C_out, H, W)                # (N, py, px, C, H, W)
    o = jnp.transpose(o, (0, 3, 4, 1, 5, 2))             # (N, C, H, py, W, px)
    o = o.reshape(N, C_out, 2 * H, 2 * W)
    return o[:, :, :H_out, :W_out]


# ---- pure-JAX reference (same ConvTranspose2d semantics) for a sanity check ----
def _convT_ref_nhwc(x, w_pt, stride):
    w = jnp.flip(jnp.transpose(w_pt, (2, 3, 0, 1)), axis=(0, 1))  # flipped HWIO
    return jax.lax.conv_general_dilated(
        x, w, window_strides=(1, 1), padding=((1, 1), (1, 1)),
        lhs_dilation=(stride, stride),
        dimension_numbers=("NHWC", "HWIO", "NHWC"),
        precision=jax.lax.Precision.HIGHEST)


def _ref_forward(x_nchw, w1_pt, w2_pt, stride):
    xh = jnp.maximum(jnp.transpose(x_nchw, (0, 2, 3, 1)), 0.0)
    r = jnp.maximum(_convT_ref_nhwc(xh, w1_pt, 1), 0.0)
    r = _convT_ref_nhwc(r, w2_pt, stride)
    return jnp.transpose(r, (0, 3, 1, 2))


if __name__ == "__main__":
    key = jax.random.PRNGKey(0)
    k1, k2, k3 = jax.random.split(key, 3)

    N, C_in, C_out, H, W, stride = 2, 4, 8, 16, 16, 2
    x = jax.random.normal(k1, (N, C_in, H, W), jnp.float32)               # NCHW
    w1_pt = 0.1 * jax.random.normal(k2, (C_in, C_in, 3, 3), jnp.float32)  # deleft[0]
    w2_pt = 0.1 * jax.random.normal(k3, (C_in, C_out, 3, 3), jnp.float32) # deleft[2]

    # bf16 MXU operands (f32 accumulation) -> slightly looser tolerance than f32.
    out = jax.block_until_ready(deresblock_forward(x, w1_pt, w2_pt, stride))
    ref = _ref_forward(x, w1_pt, w2_pt, stride)
    assert out.shape == (N, C_out, (H - 1) * stride + 1, (W - 1) * stride + 1), out.shape
    assert jnp.allclose(out, ref, atol=1e-2, rtol=1e-2), float(jnp.abs(out - ref).max())

    # Also exercise the stride=1 branch of the same fused kernel.
    out1 = jax.block_until_ready(deresblock_forward(x, w1_pt, w2_pt, 1))
    ref1 = _ref_forward(x, w1_pt, w2_pt, 1)
    assert out1.shape == (N, C_out, H, W), out1.shape
    assert jnp.allclose(out1, ref1, atol=1e-2, rtol=1e-2), float(jnp.abs(out1 - ref1).max())

    print("KERNEL_OK")
</pallas_src>

<mosaic_0001>
module attributes {stable_mosaic.version = 11 : i64} {
  func.func @_deres_kernel(%arg0: i32, %arg1: memref<2x4x256xf32, #tpu.memory_space<vmem>>, %arg2: memref<4x36xbf16, #tpu.memory_space<vmem>>, %arg3: memref<32x16xbf16, #tpu.memory_space<vmem>>, %arg4: memref<2x256xf32, #tpu.memory_space<vmem>>, %arg5: memref<2x4x8x256xf32, #tpu.memory_space<vmem>>, %arg6: memref<2x4x512xf32, #tpu.memory_space<vmem>>, %arg7: memref<36x512xf32, #tpu.memory_space<vmem>>) attributes {dimension_semantics = [#tpu.dimension_semantics<parallel>], iteration_bounds = array<i64: 1>, scalar_prefetch = 0 : i64, scratch_operands = 2 : i64, tpu.core_type = #tpu.core_type<tc>, window_params = [{transform_indices = @transform_0, window_bounds = array<i64: 2, 4, 256>}, {pipeline_mode = #tpu.pipeline_mode<synchronous>, transform_indices = @transform_1, window_bounds = array<i64: 4, 36>}, {pipeline_mode = #tpu.pipeline_mode<synchronous>, transform_indices = @transform_2, window_bounds = array<i64: 32, 16>}, {pipeline_mode = #tpu.pipeline_mode<synchronous>, transform_indices = @transform_3, window_bounds = array<i64: 2, 256>}, {transform_indices = @transform_4, window_bounds = array<i64: 2, 4, 8, 256>}]} {
    %c0 = arith.constant 0 : index
    %c0_0 = arith.constant 0 : index
    %0 = vector.load %arg4[%c0, %c0_0] : memref<2x256xf32, #tpu.memory_space<vmem>>, vector<1x256xf32>
    %c1 = arith.constant 1 : index
    %c0_1 = arith.constant 0 : index
    %1 = vector.load %arg4[%c1, %c0_1] : memref<2x256xf32, #tpu.memory_space<vmem>>, vector<1x256xf32>
    %cst = arith.constant 0.000000e+00 : f32
    %2 = vector.broadcast %cst : f32 to vector<2x4x128xf32>
    %c0_2 = arith.constant 0 : index
    %c0_3 = arith.constant 0 : index
    %c0_4 = arith.constant 0 : index
    %3 = vector.load %arg6[%c0_2, %c0_3, %c0_4] : memref<2x4x512xf32, #tpu.memory_space<vmem>>, vector<2x4x128xf32>
    tpu.vector_store %arg6[%c0_2, %c0_3, %c0_4], %2 {strides = array<i32>} : memref<2x4x512xf32, #tpu.memory_space<vmem>>, vector<2x4x128xf32>,
    %cst_5 = arith.constant 0.000000e+00 : f32
    %4 = vector.broadcast %cst_5 : f32 to vector<2x4x128xf32>
    %c0_6 = arith.constant 0 : index
    %c0_7 = arith.constant 0 : index
    %c384 = arith.constant 384 : index
    %5 = vector.load %arg6[%c0_6, %c0_7, %c384] : memref<2x4x512xf32, #tpu.memory_space<vmem>>, vector<2x4x128xf32>
    tpu.vector_store %arg6[%c0_6, %c0_7, %c384], %4 {strides = array<i32>} : memref<2x4x512xf32, #tpu.memory_space<vmem>>, vector<2x4x128xf32>,
    %c0_8 = arith.constant 0 : index
    %c0_9 = arith.constant 0 : index
    %c0_10 = arith.constant 0 : index
    %6 = vector.load %arg1[%c0_8, %c0_9, %c0_10] : memref<2x4x256xf32, #tpu.memory_space<vmem>>, vector<2x4x256xf32>
    %cst_11 = arith.constant 0.000000e+00 : f32
    %7 = vector.broadcast %cst_11 : f32 to vector<2x4x256xf32>
    %8 = arith.maximumf %6, %7 : vector<2x4x256xf32>
    %c0_12 = arith.constant 0 : index
    %c0_13 = arith.constant 0 : index
    %c128 = arith.constant 128 : index
    %9 = vector.load %arg6[%c0_12, %c0_13, %c128] : memref<2x4x512xf32, #tpu.memory_space<vmem>>, vector<2x4x256xf32>
    tpu.vector_store %arg6[%c0_12, %c0_13, %c128], %8 {strides = array<i32>} : memref<2x4x512xf32, #tpu.memory_space<vmem>>, vector<2x4x256xf32>,
    %c0_14 = arith.constant 0 : index
    %c0_15 = arith.constant 0 : index
    %c111 = arith.constant 111 : index
    %10 = vector.load %arg6[%c0_14, %c0_15, %c111] : memref<2x4x512xf32, #tpu.memory_space<vmem>>, vector<1x4x256xf32>
    %11 = vector.shape_cast %10 : vector<1x4x256xf32> to vector<4x256xf32>
    %12 = vector.broadcast %0 : vector<1x256xf32> to vector<4x256xf32>
    %13 = arith.mulf %11, %12 : vector<4x256xf32>
    %c0_16 = arith.constant 0 : index
    %c0_17 = arith.constant 0 : index
    %14 = vector.load %arg7[%c0_16, %c0_17] : memref<36x512xf32, #tpu.memory_space<vmem>>, vector<4x256xf32>
    tpu.vector_store %arg7[%c0_16, %c0_17], %13 {strides = array<i32>} : memref<36x512xf32, #tpu.memory_space<vmem>>, vector<4x256xf32>,
    %c1_18 = arith.constant 1 : index
    %c0_19 = arith.constant 0 : index
    %c111_20 = arith.constant 111 : index
    %15 = vector.load %arg6[%c1_18, %c0_19, %c111_20] : memref<2x4x512xf32, #tpu.memory_space<vmem>>, vector<1x4x256xf32>
    %16 = vector.shape_cast %15 : vector<1x4x256xf32> to vector<4x256xf32>
    %17 = vector.broadcast %0 : vector<1x256xf32> to vector<4x256xf32>
    %18 = arith.mulf %16, %17 : vector<4x256xf32>
    %c0_21 = arith.constant 0 : index
    %c256 = arith.constant 256 : index
    %19 = vector.load %arg7[%c0_21, %c256] : memref<36x512xf32, #tpu.memory_space<vmem>>, vector<4x256xf32>
    tpu.vector_store %arg7[%c0_21, %c256], %18 {strides = array<i32>} : memref<36x512xf32, #tpu.memory_space<vmem>>, vector<4x256xf32>,
    %c0_22 = arith.constant 0 : index
    %c0_23 = arith.constant 0 : index
    %c112 = arith.constant 112 : index
    %20 = vector.load %arg6[%c0_22, %c0_23, %c112] : memref<2x4x512xf32, #tpu.memory_space<vmem>>, vector<1x4x256xf32>
    %21 = vector.shape_cast %20 : vector<1x4x256xf32> to vector<4x256xf32>
    %c4 = arith.constant 4 : index
    %c0_24 = arith.constant 0 : index
    %22 = vector.load %arg7[%c4, %c0_24] : memref<36x512xf32, #tpu.memory_space<vmem>>, vector<4x256xf32>
    tpu.vector_store %arg7[%c4, %c0_24], %21 {strides = array<i32>} : memref<36x512xf32, #tpu.memory_space<vmem>>, vector<4x256xf32>,
    %c1_25 = arith.constant 1 : index
    %c0_26 = arith.constant 0 : index
    %c112_27 = arith.constant 112 : index
    %23 = vector.load %arg6[%c1_25, %c0_26, %c112_27] : memref<2x4x512xf32, #tpu.memory_space<vmem>>, vector<1x4x256xf32>
    %24 = vector.shape_cast %23 : vector<1x4x256xf32> to vector<4x256xf32>
    %c4_28 = arith.constant 4 : index
    %c256_29 = arith.constant 256 : index
    %25 = vector.load %arg7[%c4_28, %c256_29] : memref<36x512xf32, #tpu.memory_space<vmem>>, vector<4x256xf32>
    tpu.vector_store %arg7[%c4_28, %c256_29], %24 {strides = array<i32>} : memref<36x512xf32, #tpu.memory_space<vmem>>, vector<4x256xf32>,
    %c0_30 = arith.constant 0 : index
    %c0_31 = arith.constant 0 : index
    %c113 = arith.constant 113 : index
    %26 = vector.load %arg6[%c0_30, %c0_31, %c113] : memref<2x4x512xf32, #tpu.memory_space<vmem>>, vector<1x4x256xf32>
    %27 = vector.shape_cast %26 : vector<1x4x256xf32> to vector<4x256xf32>
    %28 = vector.broadcast %1 : vector<1x256xf32> to vector<4x256xf32>
    %29 = arith.mulf %27, %28 : vector<4x256xf32>
    %c8 = arith.constant 8 : index
    %c0_32 = arith.constant 0 : index
    %30 = vector.load %arg7[%c8, %c0_32] : memref<36x512xf32, #tpu.memory_space<vmem>>, vector<4x256xf32>
    tpu.vector_store %arg7[%c8, %c0_32], %29 {strides = array<i32>} : memref<36x512xf32, #tpu.memory_space<vmem>>, vector<4x256xf32>,
    %c1_33 = arith.constant 1 : index
    %c0_34 = arith.constant 0 : index
    %c113_35 = arith.constant 113 : index
    %31 = vector.load %arg6[%c1_33, %c0_34, %c113_35] : memref<2x4x512xf32, #tpu.memory_space<vmem>>, vector<1x4x256xf32>
    %32 = vector.shape_cast %31 : vector<1x4x256xf32> to vector<4x256xf32>
    %33 = vector.broadcast %1 : vector<1x256xf32> to vector<4x256xf32>
    %34 = arith.mulf %32, %33 : vector<4x256xf32>
    %c8_36 = arith.constant 8 : index
    %c256_37 = arith.constant 256 : index
    %35 = vector.load %arg7[%c8_36, %c256_37] : memref<36x512xf32, #tpu.memory_space<vmem>>, vector<4x256xf32>
    tpu.vector_store %arg7[%c8_36, %c256_37], %34 {strides = array<i32>} : memref<36x512xf32, #tpu.memory_space<vmem>>, vector<4x256xf32>,
    %c0_38 = arith.constant 0 : index
    %c0_39 = arith.constant 0 : index
    %c127 = arith.constant 127 : index
    %36 = vector.load %arg6[%c0_38, %c0_39, %c127] : memref<2x4x512xf32, #tpu.memory_space<vmem>>, vector<1x4x256xf32>
    %37 = vector.shape_cast %36 : vector<1x4x256xf32> to vector<4x256xf32>
    %38 = vector.broadcast %0 : vector<1x256xf32> to vector<4x256xf32>
    %39 = arith.mulf %37, %38 : vector<4x256xf32>
    %c12 = arith.constant 12 : index
    %c0_40 = arith.constant 0 : index
    %40 = vector.load %arg7[%c12, %c0_40] : memref<36x512xf32, #tpu.memory_space<vmem>>, vector<4x256xf32>
    tpu.vector_store %arg7[%c12, %c0_40], %39 {strides = array<i32>} : memref<36x512xf32, #tpu.memory_space<vmem>>, vector<4x256xf32>,
    %c1_41 = arith.constant 1 : index
    %c0_42 = arith.constant 0 : index
    %c127_43 = arith.constant 127 : index
    %41 = vector.load %arg6[%c1_41, %c0_42, %c127_43] : memref<2x4x512xf32, #tpu.memory_space<vmem>>, vector<1x4x256xf32>
    %42 = vector.shape_cast %41 : vector<1x4x256xf32> to vector<4x256xf32>
    %43 = vector.broadcast %0 : vector<1x256xf32> to vector<4x256xf32>
    %44 = arith.mulf %42, %43 : vector<4x256xf32>
    %c12_44 = arith.constant 12 : index
    %c256_45 = arith.constant 256 : index
    %45 = vector.load %arg7[%c12_44, %c256_45] : memref<36x512xf32, #tpu.memory_space<vmem>>, vector<4x256xf32>
    tpu.vector_store %arg7[%c12_44, %c256_45], %44 {strides = array<i32>} : memref<36x512xf32, #tpu.memory_space<vmem>>, vector<4x256xf32>,
    %c0_46 = arith.constant 0 : index
    %c0_47 = arith.constant 0 : index
    %c128_48 = arith.constant 128 : index
    %46 = vector.load %arg6[%c0_46, %c0_47, %c128_48] : memref<2x4x512xf32, #tpu.memory_space<vmem>>, vector<1x4x256xf32>
    %47 = vector.shape_cast %46 : vector<1x4x256xf32> to vector<4x256xf32>
    %c16 = arith.constant 16 : index
    %c0_49 = arith.constant 0 : index
    %48 = vector.load %arg7[%c16, %c0_49] : memref<36x512xf32, #tpu.memory_space<vmem>>, vector<4x256xf32>
    tpu.vector_store %arg7[%c16, %c0_49], %47 {strides = array<i32>} : memref<36x512xf32, #tpu.memory_space<vmem>>, vector<4x256xf32>,
    %c1_50 = arith.constant 1 : index
    %c0_51 = arith.constant 0 : index
    %c128_52 = arith.constant 128 : index
    %49 = vector.load %arg6[%c1_50, %c0_51, %c128_52] : memref<2x4x512xf32, #tpu.memory_space<vmem>>, vector<1x4x256xf32>
    %50 = vector.shape_cast %49 : vector<1x4x256xf32> to vector<4x256xf32>
    %c16_53 = arith.constant 16 : index
    %c256_54 = arith.constant 256 : index
    %51 = vector.load %arg7[%c16_53, %c256_54] : memref<36x512xf32, #tpu.memory_space<vmem>>, vector<4x256xf32>
    tpu.vector_store %arg7[%c16_53, %c256_54], %50 {strides = array<i32>} : memref<36x512xf32, #tpu.memory_space<vmem>>, vector<4x256xf32>,
    %c0_55 = arith.constant 0 : index
    %c0_56 = arith.constant 0 : index
    %c129 = arith.constant 129 : index
    %52 = vector.load %arg6[%c0_55, %c0_56, %c129] : memref<2x4x512xf32, #tpu.memory_space<vmem>>, vector<1x4x256xf32>
    %53 = vector.shape_cast %52 : vector<1x4x256xf32> to vector<4x256xf32>
    %54 = vector.broadcast %1 : vector<1x256xf32> to vector<4x256xf32>
    %55 = arith.mulf %53, %54 : vector<4x256xf32>
    %c20 = arith.constant 20 : index
    %c0_57 = arith.constant 0 : index
    %56 = vector.load %arg7[%c20, %c0_57] : memref<36x512xf32, #tpu.memory_space<vmem>>, vector<4x256xf32>
    tpu.vector_store %arg7[%c20, %c0_57], %55 {strides = array<i32>} : memref<36x512xf32, #tpu.memory_space<vmem>>, vector<4x256xf32>,
    %c1_58 = arith.constant 1 : index
    %c0_59 = arith.constant 0 : index
    %c129_60 = arith.constant 129 : index
    %57 = vector.load %arg6[%c1_58, %c0_59, %c129_60] : memref<2x4x512xf32, #tpu.memory_space<vmem>>, vector<1x4x256xf32>
    %58 = vector.shape_cast %57 : vector<1x4x256xf32> to vector<4x256xf32>
    %59 = vector.broadcast %1 : vector<1x256xf32> to vector<4x256xf32>
    %60 = arith.mulf %58, %59 : vector<4x256xf32>
    %c20_61 = arith.constant 20 : index
    %c256_62 = arith.constant 256 : index
    %61 = vector.load %arg7[%c20_61, %c256_62] : memref<36x512xf32, #tpu.memory_space<vmem>>, vector<4x256xf32>
    tpu.vector_store %arg7[%c20_61, %c256_62], %60 {strides = array<i32>} : memref<36x512xf32, #tpu.memory_space<vmem>>, vector<4x256xf32>,
    %c0_63 = arith.constant 0 : index
    %c0_64 = arith.constant 0 : index
    %c143 = arith.constant 143 : index
    %62 = vector.load %arg6[%c0_63, %c0_64, %c143] : memref<2x4x512xf32, #tpu.memory_space<vmem>>, vector<1x4x256xf32>
    %63 = vector.shape_cast %62 : vector<1x4x256xf32> to vector<4x256xf32>
    %64 = vector.broadcast %0 : vector<1x256xf32> to vector<4x256xf32>
    %65 = arith.mulf %63, %64 : vector<4x256xf32>
    %c24 = arith.constant 24 : index
    %c0_65 = arith.constant 0 : index
    %66 = vector.load %arg7[%c24, %c0_65] : memref<36x512xf32, #tpu.memory_space<vmem>>, vector<4x256xf32>
    tpu.vector_store %arg7[%c24, %c0_65], %65 {strides = array<i32>} : memref<36x512xf32, #tpu.memory_space<vmem>>, vector<4x256xf32>,
    %c1_66 = arith.constant 1 : index
    %c0_67 = arith.constant 0 : index
    %c143_68 = arith.constant 143 : index
    %67 = vector.load %arg6[%c1_66, %c0_67, %c143_68] : memref<2x4x512xf32, #tpu.memory_space<vmem>>, vector<1x4x256xf32>
    %68 = vector.shape_cast %67 : vector<1x4x256xf32> to vector<4x256xf32>
    %69 = vector.broadcast %0 : vector<1x256xf32> to vector<4x256xf32>
    %70 = arith.mulf %68, %69 : vector<4x256xf32>
    %c24_69 = arith.constant 24 : index
    %c256_70 = arith.constant 256 : index
    %71 = vector.load %arg7[%c24_69, %c256_70] : memref<36x512xf32, #tpu.memory_space<vmem>>, vector<4x256xf32>
    tpu.vector_store %arg7[%c24_69, %c256_70], %70 {strides = array<i32>} : memref<36x512xf32, #tpu.memory_space<vmem>>, vector<4x256xf32>,
    %c0_71 = arith.constant 0 : index
    %c0_72 = arith.constant 0 : index
    %c144 = arith.constant 144 : index
    %72 = vector.load %arg6[%c0_71, %c0_72, %c144] : memref<2x4x512xf32, #tpu.memory_space<vmem>>, vector<1x4x256xf32>
    %73 = vector.shape_cast %72 : vector<1x4x256xf32> to vector<4x256xf32>
    %c28 = arith.constant 28 : index
    %c0_73 = arith.constant 0 : index
    %74 = vector.load %arg7[%c28, %c0_73] : memref<36x512xf32, #tpu.memory_space<vmem>>, vector<4x256xf32>
    tpu.vector_store %arg7[%c28, %c0_73], %73 {strides = array<i32>} : memref<36x512xf32, #tpu.memory_space<vmem>>, vector<4x256xf32>,
    %c1_74 = arith.constant 1 : index
    %c0_75 = arith.constant 0 : index
    %c144_76 = arith.constant 144 : index
    %75 = vector.load %arg6[%c1_74, %c0_75, %c144_76] : memref<2x4x512xf32, #tpu.memory_space<vmem>>, vector<1x4x256xf32>
    %76 = vector.shape_cast %75 : vector<1x4x256xf32> to vector<4x256xf32>
    %c28_77 = arith.constant 28 : index
    %c256_78 = arith.constant 256 : index
    %77 = vector.load %arg7[%c28_77, %c256_78] : memref<36x512xf32, #tpu.memory_space<vmem>>, vector<4x256xf32>
    tpu.vector_store %arg7[%c28_77, %c256_78], %76 {strides = array<i32>} : memref<36x512xf32, #tpu.memory_space<vmem>>, vector<4x256xf32>,
    %c0_79 = arith.constant 0 : index
    %c0_80 = arith.constant 0 : index
    %c145 = arith.constant 145 : index
    %78 = vector.load %arg6[%c0_79, %c0_80, %c145] : memref<2x4x512xf32, #tpu.memory_space<vmem>>, vector<1x4x256xf32>
    %79 = vector.shape_cast %78 : vector<1x4x256xf32> to vector<4x256xf32>
    %80 = vector.broadcast %1 : vector<1x256xf32> to vector<4x256xf32>
    %81 = arith.mulf %79, %80 : vector<4x256xf32>
    %c32 = arith.constant 32 : index
    %c0_81 = arith.constant 0 : index
    %82 = vector.load %arg7[%c32, %c0_81] : memref<36x512xf32, #tpu.memory_space<vmem>>, vector<4x256xf32>
    tpu.vector_store %arg7[%c32, %c0_81], %81 {strides = array<i32>} : memref<36x512xf32, #tpu.memory_space<vmem>>, vector<4x256xf32>,
    %c1_82 = arith.constant 1 : index
    %c0_83 = arith.constant 0 : index
    %c145_84 = arith.constant 145 : index
    %83 = vector.load %arg6[%c1_82, %c0_83, %c145_84] : memref<2x4x512xf32, #tpu.memory_space<vmem>>, vector<1x4x256xf32>
    %84 = vector.shape_cast %83 : vector<1x4x256xf32> to vector<4x256xf32>
    %85 = vector.broadcast %1 : vector<1x256xf32> to vector<4x256xf32>
    %86 = arith.mulf %84, %85 : vector<4x256xf32>
    %c32_85 = arith.constant 32 : index
    %c256_86 = arith.constant 256 : index
    %87 = vector.load %arg7[%c32_85, %c256_86] : memref<36x512xf32, #tpu.memory_space<vmem>>, vector<4x256xf32>
    tpu.vector_store %arg7[%c32_85, %c256_86], %86 {strides = array<i32>} : memref<36x512xf32, #tpu.memory_space<vmem>>, vector<4x256xf32>,
    %c0_87 = arith.constant 0 : index
    %c0_88 = arith.constant 0 : index
    %88 = vector.load %arg2[%c0_87, %c0_88] : memref<4x36xbf16, #tpu.memory_space<vmem>>, vector<4x36xbf16>
    %c0_89 = arith.constant 0 : index
    %c0_90 = arith.constant 0 : index
    %89 = vector.load %arg7[%c0_89, %c0_90] : memref<36x512xf32, #tpu.memory_space<vmem>>, vector<36x512xf32>
    %90 = arith.truncf %89 : vector<36x512xf32> to vector<36x512xbf16>
    %cst_91 = arith.constant dense<0.000000e+00> : vector<4x512xf32>
    %91 = tpu.matmul %88, %90, %cst_91 {dimension_numbers = #tpu.dot_dimension_numbers<[1], [0], [0], [1], [0, 0, 1, 1], [], []>} : vector<4x36xbf16>, vector<36x512xbf16>, vector<4x512xf32> -> vector<4x512xf32>
    %cst_92 = arith.constant 0.000000e+00 : f32
    %92 = vector.broadcast %cst_92 : f32 to vector<4x512xf32>
    %93 = arith.maximumf %91, %92 : vector<4x512xf32>
    %94 = vector.extract_strided_slice %93 {offsets = [0, 0], sizes = [4, 256], strides = [1, 1]} : vector<4x512xf32> to vector<4x256xf32>
    %c0_93 = arith.constant 0 : index
    %c0_94 = arith.constant 0 : index
    %c128_95 = arith.constant 128 : index
    %95 = vector.load %arg6[%c0_93, %c0_94, %c128_95] : memref<2x4x512xf32, #tpu.memory_space<vmem>>, vector<1x4x256xf32>
    %96 = vector.shape_cast %95 : vector<1x4x256xf32> to vector<4x256xf32>
    %97 = vector.shape_cast %94 : vector<4x256xf32> to vector<1x4x256xf32>
    tpu.vector_store %arg6[%c0_93, %c0_94, %c128_95], %97 {strides = array<i32>} : memref<2x4x512xf32, #tpu.memory_space<vmem>>, vector<1x4x256xf32>,
    %98 = vector.extract_strided_slice %93 {offsets = [0, 256], sizes = [4, 256], strides = [1, 1]} : vector<4x512xf32> to vector<4x256xf32>
    %c1_96 = arith.constant 1 : index
    %c0_97 = arith.constant 0 : index
    %c128_98 = arith.constant 128 : index
    %99 = vector.load %arg6[%c1_96, %c0_97, %c128_98] : memref<2x4x512xf32, #tpu.memory_space<vmem>>, vector<1x4x256xf32>
    %100 = vector.shape_cast %99 : vector<1x4x256xf32> to vector<4x256xf32>
    %101 = vector.shape_cast %98 : vector<4x256xf32> to vector<1x4x256xf32>
    tpu.vector_store %arg6[%c1_96, %c0_97, %c128_98], %101 {strides = array<i32>} : memref<2x4x512xf32, #tpu.memory_space<vmem>>, vector<1x4x256xf32>,
    %c0_99 = arith.constant 0 : index
    %c0_100 = arith.constant 0 : index
    %c128_101 = arith.constant 128 : index
    %102 = vector.load %arg6[%c0_99, %c0_100, %c128_101] : memref<2x4x512xf32, #tpu.memory_space<vmem>>, vector<1x4x256xf32>
    %103 = vector.shape_cast %102 : vector<1x4x256xf32> to vector<4x256xf32>
    %c0_102 = arith.constant 0 : index
    %c0_103 = arith.constant 0 : index
    %104 = vector.load %arg7[%c0_102, %c0_103] : memref<36x512xf32, #tpu.memory_space<vmem>>, vector<4x256xf32>
    tpu.vector_store %arg7[%c0_102, %c0_103], %103 {strides = array<i32>} : memref<36x512xf32, #tpu.memory_space<vmem>>, vector<4x256xf32>,
    %c1_104 = arith.constant 1 : index
    %c0_105 = arith.constant 0 : index
    %c128_106 = arith.constant 128 : index
    %105 = vector.load %arg6[%c1_104, %c0_105, %c128_106] : memref<2x4x512xf32, #tpu.memory_space<vmem>>, vector<1x4x256xf32>
    %106 = vector.shape_cast %105 : vector<1x4x256xf32> to vector<4x256xf32>
    %c0_107 = arith.constant 0 : index
    %c256_108 = arith.constant 256 : index
    %107 = vector.load %arg7[%c0_107, %c256_108] : memref<36x512xf32, #tpu.memory_space<vmem>>, vector<4x256xf32>
    tpu.vector_store %arg7[%c0_107, %c256_108], %106 {strides = array<i32>} : memref<36x512xf32, #tpu.memory_space<vmem>>, vector<4x256xf32>,
    %c0_109 = arith.constant 0 : index
    %c0_110 = arith.constant 0 : index
    %c129_111 = arith.constant 129 : index
    %108 = vector.load %arg6[%c0_109, %c0_110, %c129_111] : memref<2x4x512xf32, #tpu.memory_space<vmem>>, vector<1x4x256xf32>
    %109 = vector.shape_cast %108 : vector<1x4x256xf32> to vector<4x256xf32>
    %110 = vector.broadcast %1 : vector<1x256xf32> to vector<4x256xf32>
    %111 = arith.mulf %109, %110 : vector<4x256xf32>
    %c4_112 = arith.constant 4 : index
    %c0_113 = arith.constant 0 : index
    %112 = vector.load %arg7[%c4_112, %c0_113] : memref<36x512xf32, #tpu.memory_space<vmem>>, vector<4x256xf32>
    tpu.vector_store %arg7[%c4_112, %c0_113], %111 {strides = array<i32>} : memref<36x512xf32, #tpu.memory_space<vmem>>, vector<4x256xf32>,
    %c1_114 = arith.constant 1 : index
    %c0_115 = arith.constant 0 : index
    %c129_116 = arith.constant 129 : index
    %113 = vector.load %arg6[%c1_114, %c0_115, %c129_116] : memref<2x4x512xf32, #tpu.memory_space<vmem>>, vector<1x4x256xf32>
    %114 = vector.shape_cast %113 : vector<1x4x256xf32> to vector<4x256xf32>
    %115 = vector.broadcast %1 : vector<1x256xf32> to vector<4x256xf32>
    %116 = arith.mulf %114, %115 : vector<4x256xf32>
    %c4_117 = arith.constant 4 : index
    %c256_118 = arith.constant 256 : index
    %117 = vector.load %arg7[%c4_117, %c256_118] : memref<36x512xf32, #tpu.memory_space<vmem>>, vector<4x256xf32>
    tpu.vector_store %arg7[%c4_117, %c256_118], %116 {strides = array<i32>} : memref<36x512xf32, #tpu.memory_space<vmem>>, vector<4x256xf32>,
    %c0_119 = arith.constant 0 : index
    %c0_120 = arith.constant 0 : index
    %c144_121 = arith.constant 144 : index
    %118 = vector.load %arg6[%c0_119, %c0_120, %c144_121] : memref<2x4x512xf32, #tpu.memory_space<vmem>>, vector<1x4x256xf32>
    %119 = vector.shape_cast %118 : vector<1x4x256xf32> to vector<4x256xf32>
    %c8_122 = arith.constant 8 : index
    %c0_123 = arith.constant 0 : index
    %120 = vector.load %arg7[%c8_122, %c0_123] : memref<36x512xf32, #tpu.memory_space<vmem>>, vector<4x256xf32>
    tpu.vector_store %arg7[%c8_122, %c0_123], %119 {strides = array<i32>} : memref<36x512xf32, #tpu.memory_space<vmem>>, vector<4x256xf32>,
    %c1_124 = arith.constant 1 : index
    %c0_125 = arith.constant 0 : index
    %c144_126 = arith.constant 144 : index
    %121 = vector.load %arg6[%c1_124, %c0_125, %c144_126] : memref<2x4x512xf32, #tpu.memory_space<vmem>>, vector<1x4x256xf32>
    %122 = vector.shape_cast %121 : vector<1x4x256xf32> to vector<4x256xf32>
    %c8_127 = arith.constant 8 : index
    %c256_128 = arith.constant 256 : index
    %123 = vector.load %arg7[%c8_127, %c256_128] : memref<36x512xf32, #tpu.memory_space<vmem>>, vector<4x256xf32>
    tpu.vector_store %arg7[%c8_127, %c256_128], %122 {strides = array<i32>} : memref<36x512xf32, #tpu.memory_space<vmem>>, vector<4x256xf32>,
    %c0_129 = arith.constant 0 : index
    %c0_130 = arith.constant 0 : index
    %c145_131 = arith.constant 145 : index
    %124 = vector.load %arg6[%c0_129, %c0_130, %c145_131] : memref<2x4x512xf32, #tpu.memory_space<vmem>>, vector<1x4x256xf32>
    %125 = vector.shape_cast %124 : vector<1x4x256xf32> to vector<4x256xf32>
    %126 = vector.broadcast %1 : vector<1x256xf32> to vector<4x256xf32>
    %127 = arith.mulf %125, %126 : vector<4x256xf32>
    %c12_132 = arith.constant 12 : index
    %c0_133 = arith.constant 0 : index
    %128 = vector.load %arg7[%c12_132, %c0_133] : memref<36x512xf32, #tpu.memory_space<vmem>>, vector<4x256xf32>
    tpu.vector_store %arg7[%c12_132, %c0_133], %127 {strides = array<i32>} : memref<36x512xf32, #tpu.memory_space<vmem>>, vector<4x256xf32>,
    %c1_134 = arith.constant 1 : index
    %c0_135 = arith.constant 0 : index
    %c145_136 = arith.constant 145 : index
    %129 = vector.load %arg6[%c1_134, %c0_135, %c145_136] : memref<2x4x512xf32, #tpu.memory_space<vmem>>, vector<1x4x256xf32>
    %130 = vector.shape_cast %129 : vector<1x4x256xf32> to vector<4x256xf32>
    %131 = vector.broadcast %1 : vector<1x256xf32> to vector<4x256xf32>
    %132 = arith.mulf %130, %131 : vector<4x256xf32>
    %c12_137 = arith.constant 12 : index
    %c256_138 = arith.constant 256 : index
    %133 = vector.load %arg7[%c12_137, %c256_138] : memref<36x512xf32, #tpu.memory_space<vmem>>, vector<4x256xf32>
    tpu.vector_store %arg7[%c12_137, %c256_138], %132 {strides = array<i32>} : memref<36x512xf32, #tpu.memory_space<vmem>>, vector<4x256xf32>,
    %c0_139 = arith.constant 0 : index
    %c0_140 = arith.constant 0 : index
    %134 = vector.load %arg3[%c0_139, %c0_140] : memref<32x16xbf16, #tpu.memory_space<vmem>>, vector<32x16xbf16>
    %c0_141 = arith.constant 0 : index
    %c0_142 = arith.constant 0 : index
    %135 = vector.load %arg7[%c0_141, %c0_142] : memref<36x512xf32, #tpu.memory_space<vmem>>, vector<16x512xf32>
    %136 = arith.truncf %135 : vector<16x512xf32> to vector<16x512xbf16>
    %cst_143 = arith.constant dense<0.000000e+00> : vector<32x512xf32>
    %137 = tpu.matmul %134, %136, %cst_143 {dimension_numbers = #tpu.dot_dimension_numbers<[1], [0], [0], [1], [0, 0, 1, 1], [], []>} : vector<32x16xbf16>, vector<16x512xbf16>, vector<32x512xf32> -> vector<32x512xf32>
    %138 = vector.extract_strided_slice %137 {offsets = [0, 0], sizes = [8, 256], strides = [1, 1]} : vector<32x512xf32> to vector<8x256xf32>
    %c0_144 = arith.constant 0 : index
    %c0_145 = arith.constant 0 : index
    %c0_146 = arith.constant 0 : index
    %c0_147 = arith.constant 0 : index
    %139 = vector.load %arg5[%c0_144, %c0_145, %c0_146, %c0_147] : memref<2x4x8x256xf32, #tpu.memory_space<vmem>>, vector<1x1x8x256xf32>
    %140 = vector.shape_cast %139 : vector<1x1x8x256xf32> to vector<8x256xf32>
    %141 = vector.shape_cast %138 : vector<8x256xf32> to vector<1x1x8x256xf32>
    tpu.vector_store %arg5[%c0_144, %c0_145, %c0_146, %c0_147], %141 {strides = array<i32>} : memref<2x4x8x256xf32, #tpu.memory_space<vmem>>, vector<1x1x8x256xf32>,
    %142 = vector.extract_strided_slice %137 {offsets = [8, 0], sizes = [8, 256], strides = [1, 1]} : vector<32x512xf32> to vector<8x256xf32>
    %c0_148 = arith.constant 0 : index
    %c1_149 = arith.constant 1 : index
    %c0_150 = arith.constant 0 : index
    %c0_151 = arith.constant 0 : index
    %143 = vector.load %arg5[%c0_148, %c1_149, %c0_150, %c0_151] : memref<2x4x8x256xf32, #tpu.memory_space<vmem>>, vector<1x1x8x256xf32>
    %144 = vector.shape_cast %143 : vector<1x1x8x256xf32> to vector<8x256xf32>
    %145 = vector.shape_cast %142 : vector<8x256xf32> to vector<1x1x8x256xf32>
    tpu.vector_store %arg5[%c0_148, %c1_149, %c0_150, %c0_151], %145 {strides = array<i32>} : memref<2x4x8x256xf32, #tpu.memory_space<vmem>>, vector<1x1x8x256xf32>,
    %146 = vector.extract_strided_slice %137 {offsets = [16, 0], sizes = [8, 256], strides = [1, 1]} : vector<32x512xf32> to vector<8x256xf32>
    %c0_152 = arith.constant 0 : index
    %c2 = arith.constant 2 : index
    %c0_153 = arith.constant 0 : index
    %c0_154 = arith.constant 0 : index
    %147 = vector.load %arg5[%c0_152, %c2, %c0_153, %c0_154] : memref<2x4x8x256xf32, #tpu.memory_space<vmem>>, vector<1x1x8x256xf32>
    %148 = vector.shape_cast %147 : vector<1x1x8x256xf32> to vector<8x256xf32>
    %149 = vector.shape_cast %146 : vector<8x256xf32> to vector<1x1x8x256xf32>
    tpu.vector_store %arg5[%c0_152, %c2, %c0_153, %c0_154], %149 {strides = array<i32>} : memref<2x4x8x256xf32, #tpu.memory_space<vmem>>, vector<1x1x8x256xf32>,
    %150 = vector.extract_strided_slice %137 {offsets = [24, 0], sizes = [8, 256], strides = [1, 1]} : vector<32x512xf32> to vector<8x256xf32>
    %c0_155 = arith.constant 0 : index
    %c3 = arith.constant 3 : index
    %c0_156 = arith.constant 0 : index
    %c0_157 = arith.constant 0 : index
    %151 = vector.load %arg5[%c0_155, %c3, %c0_156, %c0_157] : memref<2x4x8x256xf32, #tpu.memory_space<vmem>>, vector<1x1x8x256xf32>
    %152 = vector.shape_cast %151 : vector<1x1x8x256xf32> to vector<8x256xf32>
    %153 = vector.shape_cast %150 : vector<8x256xf32> to vector<1x1x8x256xf32>
    tpu.vector_store %arg5[%c0_155, %c3, %c0_156, %c0_157], %153 {strides = array<i32>} : memref<2x4x8x256xf32, #tpu.memory_space<vmem>>, vector<1x1x8x256xf32>,
    %154 = vector.extract_strided_slice %137 {offsets = [0, 256], sizes = [8, 256], strides = [1, 1]} : vector<32x512xf32> to vector<8x256xf32>
    %c1_158 = arith.constant 1 : index
    %c0_159 = arith.constant 0 : index
    %c0_160 = arith.constant 0 : index
    %c0_161 = arith.constant 0 : index
    %155 = vector.load %arg5[%c1_158, %c0_159, %c0_160, %c0_161] : memref<2x4x8x256xf32, #tpu.memory_space<vmem>>, vector<1x1x8x256xf32>
    %156 = vector.shape_cast %155 : vector<1x1x8x256xf32> to vector<8x256xf32>
    %157 = vector.shape_cast %154 : vector<8x256xf32> to vector<1x1x8x256xf32>
    tpu.vector_store %arg5[%c1_158, %c0_159, %c0_160, %c0_161], %157 {strides = array<i32>} : memref<2x4x8x256xf32, #tpu.memory_space<vmem>>, vector<1x1x8x256xf32>,
    %158 = vector.extract_strided_slice %137 {offsets = [8, 256], sizes = [8, 256], strides = [1, 1]} : vector<32x512xf32> to vector<8x256xf32>
    %c1_162 = arith.constant 1 : index
    %c1_163 = arith.constant 1 : index
    %c0_164 = arith.constant 0 : index
    %c0_165 = arith.constant 0 : index
    %159 = vector.load %arg5[%c1_162, %c1_163, %c0_164, %c0_165] : memref<2x4x8x256xf32, #tpu.memory_space<vmem>>, vector<1x1x8x256xf32>
    %160 = vector.shape_cast %159 : vector<1x1x8x256xf32> to vector<8x256xf32>
    %161 = vector.shape_cast %158 : vector<8x256xf32> to vector<1x1x8x256xf32>
    tpu.vector_store %arg5[%c1_162, %c1_163, %c0_164, %c0_165], %161 {strides = array<i32>} : memref<2x4x8x256xf32, #tpu.memory_space<vmem>>, vector<1x1x8x256xf32>,
    %162 = vector.extract_strided_slice %137 {offsets = [16, 256], sizes = [8, 256], strides = [1, 1]} : vector<32x512xf32> to vector<8x256xf32>
    %c1_166 = arith.constant 1 : index
    %c2_167 = arith.constant 2 : index
    %c0_168 = arith.constant 0 : index
    %c0_169 = arith.constant 0 : index
    %163 = vector.load %arg5[%c1_166, %c2_167, %c0_168, %c0_169] : memref<2x4x8x256xf32, #tpu.memory_space<vmem>>, vector<1x1x8x256xf32>
    %164 = vector.shape_cast %163 : vector<1x1x8x256xf32> to vector<8x256xf32>
    %165 = vector.shape_cast %162 : vector<8x256xf32> to vector<1x1x8x256xf32>
    tpu.vector_store %arg5[%c1_166, %c2_167, %c0_168, %c0_169], %165 {strides = array<i32>} : memref<2x4x8x256xf32, #tpu.memory_space<vmem>>, vector<1x1x8x256xf32>,
    %166 = vector.extract_strided_slice %137 {offsets = [24, 256], sizes = [8, 256], strides = [1, 1]} : vector<32x512xf32> to vector<8x256xf32>
    %c1_170 = arith.constant 1 : index
    %c3_171 = arith.constant 3 : index
    %c0_172 = arith.constant 0 : index
    %c0_173 = arith.constant 0 : index
    %167 = vector.load %arg5[%c1_170, %c3_171, %c0_172, %c0_173] : memref<2x4x8x256xf32, #tpu.memory_space<vmem>>, vector<1x1x8x256xf32>
    %168 = vector.shape_cast %167 : vector<1x1x8x256xf32> to vector<8x256xf32>
    %169 = vector.shape_cast %166 : vector<8x256xf32> to vector<1x1x8x256xf32>
    tpu.vector_store %arg5[%c1_170, %c3_171, %c0_172, %c0_173], %169 {strides = array<i32>} : memref<2x4x8x256xf32, #tpu.memory_space<vmem>>, vector<1x1x8x256xf32>,
    return
  }
  func.func @transform_0(%arg0: i32) -> (i32, i32, i32) {
    %c0_i32 = arith.constant 0 : i32
    %c0_i32_0 = arith.constant 0 : i32
    %c0_i32_1 = arith.constant 0 : i32
    return %arg0, %c0_i32, %c0_i32_0 : i32, i32, i32
  }
  func.func @transform_1(%arg0: i32) -> (i32, i32) {
    %c0_i32 = arith.constant 0 : i32
    %c0_i32_0 = arith.constant 0 : i32
    %c0_i32_1 = arith.constant 0 : i32
    return %c0_i32, %c0_i32_0 : i32, i32
  }
  func.func @transform_2(%arg0: i32) -> (i32, i32) {
    %c0_i32 = arith.constant 0 : i32
    %c0_i32_0 = arith.constant 0 : i32
    %c0_i32_1 = arith.constant 0 : i32
    return %c0_i32, %c0_i32_0 : i32, i32
  }
  func.func @transform_3(%arg0: i32) -> (i32, i32) {
    %c0_i32 = arith.constant 0 : i32
    %c0_i32_0 = arith.constant 0 : i32
    %c0_i32_1 = arith.constant 0 : i32
    return %c0_i32, %c0_i32_0 : i32, i32
  }
  func.func @transform_4(%arg0: i32) -> (i32, i32, i32, i32) {
    %c0_i32 = arith.constant 0 : i32
    %c0_i32_0 = arith.constant 0 : i32
    %c0_i32_1 = arith.constant 0 : i32
    %c0_i32_2 = arith.constant 0 : i32
    return %arg0, %c0_i32, %c0_i32_0, %c0_i32_1 : i32, i32, i32, i32
  }
}

</mosaic_0001>

<bundles_post_ra>
// kernel: tpu_custom_call.1
= control target key start
LH: loop header
LB: loop body
LE: loop exit
PB: predicated region body
PF: predicated region fallthrough
CT: control target
= control target key end

     0   :  { %v35_v0 = vlaneseq  ;;  %v922_v7 = vmov 0.0   ;;  %s1250_s0 = inlined_call_operand.vmem [shape: f32[2,4,256], index: 0, kind: input, shape index: {}]   ;;  %s1251_s1 = inlined_call_operand.vmem [shape: bf16[4,36], index: 1, kind: input, shape index: {}]   ;;  %s1252_s2 = inlined_call_operand.vmem [shape: bf16[32,16], index: 2, kind: input, shape index: {}]   ;;  %s1253_s3 = inlined_call_operand.vmem [shape: f32[2,256], index: 3, kind: input, shape index: {}]   ;;  %s1254_s4 = inlined_call_operand.hbm [shape: f32[2,4,8,256], index: 4, kind: output, shape index: {}]  }
   0x1   :  { %v26_v1 = vld [vmem:[%s1250_s0] sm:$0xff]  ;;  %v27_v5 = vld [vmem:[%s1250_s0 + $0x8] sm:$0xff]  ;;  %24 = vst [vmem:[#allocation2 + $0xc] sm:$0xf] %v922_v7  ;;  %22 = vst [vmem:[#allocation2] sm:$0xf] %v922_v7 }
   0x2   :  { %v962_v2 = vmax.f32 %v26_v1, 0.0  ;;  %v862_v3 = vld [vmem:[%s1253_s3 + $0x1] ss:$2 sm:$0x3]  ;;  %v36_v4 = vshrl.u32 %v35_v0, 7  ;;  %v974_v8 = vmax.f32 %v27_v5, 0.0 }
   0x3   :  { %v19_v6 = vld [vmem:[%s1253_s3] ss:$2 sm:$0x3]  ;;  %23 = vst [vmem:[#allocation2 + $0x10] sm:$0xf] %v922_v7 }
   0x4   :  { %30 = vst [vmem:[#allocation2 + $0x4] sm:$0xff] %v962_v2  ;;  %25 = vst [vmem:[#allocation2 + $0x1c] sm:$0xf] %v922_v7  ;;  %v37_v9 = vsub.s32 0, %v36_v4  ;;  %v41_v10 = vsub.s32 1, %v36_v4 }
   0x5   :  { %234 = vst [vmem:[#allocation3 + $0x8] sm:$0xf] %v962_v2  ;;  %31 = vst [vmem:[#allocation2 + $0x14] sm:$0xff] %v974_v8 }
   0x6   :  { %240 = vst [vmem:[#allocation3 + $0x28] sm:$0xf] %v974_v8  ;;  %v132_v11 = vrot.slane %v862_v3, %v37_v9  ;;  %v136_v12 = vrot.slane %v862_v3, %v41_v10  ;;  %v38_v13 = vrot.slane %v19_v6, %v37_v9  ;;  %v42_v14 = vrot.slane %v19_v6, %v41_v10 }
   0x7   :  { %9 = vsyncpa [#allocation5], 0  ;;  %s923_s0 = smov 17   ;;  %s924_s3 = smov 1   ;;  %v336_v19 = vcombine.low %v962_v2, %v962_v2  ;;  %v355_v20 = vcombine.low %v974_v8, %v974_v8  ;;  %vm62_vm0 = vcmask 138240   ;;  %vm203_vm1 = vcmask 7168  }
   0x8   :  { %v137_v15 = vcombine.low %v132_v11, %v136_v12  ;;  %v43_v16 = vcombine.low %v38_v13, %v42_v14  ;;  %s925_s23 = smov 15   ;;  %s926_s24 = smov 111   ;;  %v890_v17 = vld [vmem:[#allocation2 + $0xc] ss:$0 sps:$4 sm:$0xff]   ;;  %vm156_vm2 = vcmask 121856   ;;  %vm344_vm3 = vcmask 916480  }
   0x9   :  { %s927_s25 = smov 113   ;;  %s928_s26 = smov 127   ;;  %v370_v29 = vld [vmem:[#allocation2 + $0xc] sm:$0xf]  ;;  %vm187_vm4 = vcmask 1039360   ;;  %vm101_vm5 = vcmask 130048  }
   0xa   :  { %371 = vrot.lane.b32.xlu0 %v137_v15, %s923_s0  ;;  %244 = vrot.lane.b32.xlu1 %v137_v15, %s924_s3  ;;  %s929_s27 = smov 112   ;;  %s930_s28 = smov 16   ;;  %v289_v37 = vld [vmem:[#allocation2 + $0xc] sm:$0xf]  ;;  %vm47_vm6 = vcmask 908288   ;;  %vm141_vm7 = vcmask 924672  }
   0xb   :  { %v891_v18 = vld [vmem:[#allocation2 + $0x1c] ss:$0 sps:$4 sm:$0xff]   ;;  %v892_v21 = vld [vmem:[#allocation2 + $0x8] ss:$0 sps:$4 sm:$0xff]   ;;  %v997_v22 = vld [vmem:[#allocation2] sm:$0xff]  ;;  %vm450_vm8 = vcmask 1041408  }
   0xc   :  { %v893_v23 = vld [vmem:[#allocation2 + $0x18] ss:$0 sps:$4 sm:$0xff]   ;;  %v1002_v24 = vld [vmem:[#allocation2 + $0x10] sm:$0xff]  ;;  %v93_v25 = vcombine.low %v997_v22, %v997_v22  ;;  %v395_v28 = vld [vmem:[#allocation2 + $0x1c] sm:$0xf]  ;;  %vm446_vm9 = vcmask 293888  }
   0xd   :  { %v112_v26 = vcombine.low %v1002_v24, %v1002_v24  ;;  %v314_v43 = vld [vmem:[#allocation2 + $0x1c] sm:$0xf]  ;;  %v33_v47 = vld [vmem:[#allocation2 + $0x8] sm:$0xf]  ;;  %v71_v56 = vld [vmem:[#allocation2 + $0x18] sm:$0xf] }
   0xe   :  { %290 = vrot.lane.b32.xlu0 %v43_v16, %s925_s23  ;;  %44 = vrot.lane.b32.xlu1 %v43_v16, %s926_s24  ;;  %v127_v60 = vld [vmem:[#allocation2 + $0x8] sm:$0xf]  ;;  %v164_v10 = vld [vmem:[#allocation2 + $0x18] sm:$0xf] }
  0x12   :  { %138 = vrot.lane.b32.xlu0 %v137_v15, %s927_s25  ;;  %184 = vrot.lane.b32.xlu1 %v43_v16, %s928_s26 }
  0x16   :  { %340 = vrot.lane.b32.xlu0 %v962_v2, %s929_s27  ;;  %342 = vrot.lane.b32.xlu1 %v890_v17, %s929_s27 }
  0x1a   :  { %359 = vrot.lane.b32.xlu0 %v974_v8, %s929_s27  ;;  %361 = vrot.lane.b32.xlu1 %v891_v18, %s929_s27 }
  0x1e   :  { %338 = vrot.lane.b32.xlu0 %v336_v19, %s929_s27  ;;  %357 = vrot.lane.b32.xlu1 %v355_v20, %s929_s27 }
  0x22   :  { %97 = vrot.lane.b32.xlu0 %v997_v22, %s930_s28  ;;  %99 = vrot.lane.b32.xlu1 %v892_v21, %s930_s28 }
  0x26   :  { %116 = vrot.lane.b32.xlu0 %v1002_v24, %s930_s28  ;;  %118 = vrot.lane.b32.xlu1 %v893_v23, %s930_s28 }
  0x2a   :  { %95 = vrot.lane.b32.xlu0 %v93_v25, %s930_s28  ;;  %114 = vrot.lane.b32.xlu1 %v112_v26, %s930_s28 }
  0x7c   :  { %v372_v27 = vpop.permute.xlu0 %371  ;;  %v245_v30 = vpop.permute.xlu1 %244 }
  0x7d   :  { %v1013_v31 = vrot.slane %v372_v27, 4  ;;  %v1015_v32 = vrot.slane %v245_v30, 4 }
  0x7f   :  { %v397_v33 = vmul.f32 %v395_v28, %v1013_v31  ;;  %v378_v34 = vmul.f32 %v1013_v31, %v370_v29  ;;  %v1021_v35 = vsel %vm62_vm0, %v1013_v31, %v372_v27  ;;  %v1029_v40 = vsel %vm203_vm1, %v1015_v32, %v245_v30 }
  0x80   :  { %v291_v36 = vpop.permute.xlu0 %290  ;;  %v1023_v38 = vpop.permute.xlu1 %44  ;;  %v1033_v41 = vmul.f32 %v1021_v35, %v962_v2  ;;  %v1042_v46 = vmul.f32 %v1029_v40, %v962_v2  ;;  %v1052_v54 = vmul.f32 %v1029_v40, %v974_v8  ;;  %v396_v21 = vmul.f32 %v1021_v35, %v974_v8 }
  0x81   :  { %v292_v39 = vrot.slane %v291_v36, 4  ;;  %405 = vrot.lane.b32.xlu1 %v397_v33, %s926_s24  ;;  %386 = vrot.lane.b32.xlu0 %v378_v34, %s926_s24  ;;  %v46_v48 = vrot.slane %v1023_v38, 4  ;;  %v243_v33 = vld [vmem:[#allocation2 + $0xc] sm:$0xf] }
  0x83   :  { %v297_v42 = vmul.f32 %v292_v39, %v289_v37  ;;  %v316_v49 = vmul.f32 %v314_v43, %v292_v39  ;;  %v52_v52 = vmul.f32 %v46_v48, %v33_v47  ;;  %v293_v55 = vsel %vm156_vm2, %v292_v39, %v291_v36 }
  0x84   :  { %v1035_v44 = vpop.permute.xlu0 %138  ;;  %v185_v45 = vpop.permute.xlu1 %184  ;;  %v296_v0 = vmul.f32 %v293_v55, %v962_v2  ;;  %v73_v1 = vmul.f32 %v71_v56, %v46_v48  ;;  %v48_v16 = vsel %vm47_vm6, %v46_v48, %v1023_v38  ;;  %v315_v29 = vmul.f32 %v293_v55, %v974_v8  ;;  %v269_v38 = vld [vmem:[#allocation2 + $0x1c] sm:$0xf] }
  0x85   :  { %382 = vrot.lane.b32.xlu0 %v1033_v41, %s926_s24  ;;  %305 = vrot.lane.b32.xlu1 %v297_v42, %s927_s25  ;;  %v1048_v53 = vrot.slane %v185_v45, 4  ;;  %v140_v62 = vrot.slane %v1035_v44, 4  ;;  %v51_v20 = vmul.f32 %v997_v22, %v48_v16  ;;  %v72_v34 = vmul.f32 %v1002_v24, %v48_v16 }
  0x86   :  { %v400_v36 = vcombine.high %v396_v21, %v396_v21  ;;  %v251_v37 = vmul.f32 %v1015_v32, %v243_v33  ;;  %v300_v42 = vcombine.high %v296_v0, %v296_v0  ;;  %v271_v43 = vmul.f32 %v269_v38, %v1015_v32 }
  0x87   :  { %v188_v63 = vsel %vm187_vm4, %v1048_v53, %v185_v45  ;;  %v146_v3 = vmul.f32 %v140_v62, %v127_v60  ;;  %v166_v15 = vmul.f32 %v164_v10, %v140_v62  ;;  %v142_v23 = vsel %vm141_vm7, %v140_v62, %v1035_v44  ;;  %v572_v60 = vld [vmem:[#allocation2 + $0xc] sm:$0xf] }
  0x88   :  { %v341_v50 = vpop.permute.xlu0 %340  ;;  %v343_v51 = vpop.permute.xlu1 %342  ;;  %v1065_v6 = vmul.f32 %v188_v63, %v997_v22  ;;  %v1076_v14 = vmul.f32 %v188_v63, %v1002_v24  ;;  %v145_v30 = vmul.f32 %v142_v23, %v997_v22  ;;  %v255_v39 = vcombine.low %v251_v37, %v251_v37  ;;  %v183_v22 = vld [vmem:[#allocation2 + $0x8] sm:$0xf] }
  0x89   :  { %258 = vrot.lane.b32.xlu0 %v1042_v46, %s928_s26  ;;  %324 = vrot.lane.b32.xlu1 %v316_v49, %s927_s25  ;;  %v346_v57 = vsel %vm344_vm3, %v341_v50, %v343_v51  ;;  %v232_v44 = vcombine.high %v962_v2, %v962_v2  ;;  %v275_v45 = vcombine.low %v271_v43, %v271_v43  ;;  %v211_v49 = vld [vmem:[#allocation2 + $0x18] sm:$0xf] }
  0x8a   :  { %350 = vst [vmem:[#allocation3 + $0x10] sm:$0xf0] %v346_v57  ;;  %v319_v47 = vcombine.high %v315_v29, %v315_v29  ;;  %v192_v48 = vmul.f32 %v1048_v53, %v183_v22  ;;  %v254_v2 = vcombine.low %v1042_v46, %v1042_v46  ;;  %v55_v56 = vcombine.high %v51_v20, %v51_v20 }
  0x8b   :  { %235 = vst [vmem:[#allocation3 + $0x88] sm:$0xf] %v232_v44  ;;  %v76_v57 = vcombine.high %v72_v34, %v72_v34  ;;  %v165_v46 = vmul.f32 %v142_v23, %v1002_v24  ;;  %v195_v24 = vcombine.low %v1065_v6, %v1065_v6  ;;  %v574_v62 = vmul.f32 %v572_v60, %v1015_v32 }
  0x8c   :  { %v360_v58 = vpop.permute.xlu0 %359  ;;  %v362_v59 = vpop.permute.xlu1 %361  ;;  %v196_v51 = vcombine.low %v192_v48, %v192_v48 }
  0x8d   :  { %278 = vrot.lane.b32.xlu0 %v1052_v54, %s928_s26  ;;  %60 = vrot.lane.b32.xlu1 %v52_v52, %s923_s0  ;;  %v364_v61 = vsel %vm344_vm3, %v360_v58, %v362_v59  ;;  %v213_v52 = vmul.f32 %v211_v49, %v1048_v53  ;;  %v149_v53 = vcombine.high %v145_v30, %v145_v30 }
  0x8e   :  { %368 = vst [vmem:[#allocation3 + $0x60] sm:$0xf0] %v364_v61  ;;  %v169_v59 = vcombine.high %v165_v46, %v165_v46  ;;  %v646_v61 = vld [vmem:[#allocation2 + $0xc] sm:$0xf] }
  0x8f   :  { %v217_v55 = vcombine.low %v213_v52, %v213_v52  ;;  %v648_v63 = vmul.f32 %v646_v61, %v1013_v31 }
  0x90   :  { %v339_v4 = vpop.permute.xlu0 %338  ;;  %v358_v5 = vpop.permute.xlu1 %357 }
  0x91   :  { %81 = vrot.lane.b32.xlu1 %v73_v1, %s923_s0  ;;  %301 = vrot.lane.b32.xlu0 %v296_v0, %s927_s25  ;;  %v345_v7 = vsel %vm344_vm3, %v339_v4, %v341_v50  ;;  %v363_v9 = vsel %vm344_vm3, %v358_v5, %v360_v58  ;;  %v238_v50 = vcombine.high %v974_v8, %v974_v8  ;;  %v592_v0 = vld [vmem:[#allocation2 + $0x1c] sm:$0xf] }
  0x92   :  { %349 = vst [vmem:[#allocation3 + $0x58] sm:$0xf0] %v345_v7  ;;  %367 = vst [vmem:[#allocation3 + $0x98] sm:$0xf0] %v363_v9  ;;  %v381_v8 = vcombine.high %v1033_v41, %v1033_v41  ;;  %v274_v58 = vcombine.low %v1052_v54, %v1052_v54  ;;  %v216_v41 = vcombine.low %v1076_v14, %v1076_v14  ;;  %v666_v1 = vld [vmem:[#allocation2 + $0x1c] sm:$0xf] }
  0x93   :  { %241 = vst [vmem:[#allocation3 + $0x40] sm:$0xf] %v238_v50  ;;  %v931_v54 = vmov 0   ;;  %v652_v4 = vcombine.low %v648_v63, %v648_v63  ;;  %v594_v5 = vmul.f32 %v592_v0, %v1015_v32 }
  0x94   :  { %v98_v11 = vpop.permute.xlu0 %97  ;;  %v100_v12 = vpop.permute.xlu1 %99  ;;  %495 = vmatprep.mubr.bf16.mxu0 %v931_v54  ;;  %536 = vmatprep.mubr.bf16.mxu1 %v931_v54 }
  0x95   :  { %199 = vrot.lane.b32.xlu0 %v1065_v6, %s924_s3  ;;  %154 = vrot.lane.b32.xlu1 %v146_v3, %s925_s23  ;;  %v103_v13 = vsel %vm101_vm5, %v98_v11, %v100_v12  ;;  %v578_v3 = vcombine.low %v574_v62, %v574_v62  ;;  %v668_v6 = vmul.f32 %v666_v1, %v1013_v31 }
  0x96   :  { %107 = vst [vmem:[#allocation3 + $0x38] sm:$0xf0] %v103_v13  ;;  %v598_v7 = vcombine.low %v594_v5, %v594_v5 }
  0x97   :  { %v672_v9 = vcombine.low %v668_v6, %v668_v6 }
  0x98   :  { %v117_v17 = vpop.permute.xlu0 %116  ;;  %v119_v18 = vpop.permute.xlu1 %118 }
  0x99   :  { %220 = vrot.lane.b32.xlu0 %v1076_v14, %s924_s3  ;;  %174 = vrot.lane.b32.xlu1 %v166_v15, %s925_s23  ;;  %v121_v19 = vsel %vm101_vm5, %v117_v17, %v119_v18 }
  0x9a   :  { %125 = vst [vmem:[#allocation3 + $0x18] sm:$0xf0] %v121_v19 }
  0x9c   :  { %v96_v25 = vpop.permute.xlu0 %95  ;;  %v115_v26 = vpop.permute.xlu1 %114 }
  0x9d   :  { %56 = vrot.lane.b32.xlu0 %v51_v20, %s923_s0  ;;  %401 = vrot.lane.b32.xlu1 %v396_v21, %s926_s24  ;;  %v102_v27 = vsel %vm101_vm5, %v96_v25, %v98_v11  ;;  %v120_v28 = vsel %vm101_vm5, %v115_v26, %v117_v17 }
  0x9e   :  { %106 = vst [vmem:[#allocation3] sm:$0xf0] %v102_v27  ;;  %124 = vst [vmem:[#allocation3 + $0x50] sm:$0xf0] %v120_v28 }
  0xa1   :  { %320 = vrot.lane.b32.xlu1 %v315_v29, %s927_s25  ;;  %150 = vrot.lane.b32.xlu0 %v145_v30, %s925_s23 }
  0xa5   :  { %77 = vrot.lane.b32.xlu1 %v72_v34, %s923_s0  ;;  %403 = vrot.lane.b32.xlu0 %v400_v36, %s926_s24 }
  0xa9   :  { %260 = vrot.lane.b32.xlu1 %v255_v39, %s928_s26  ;;  %303 = vrot.lane.b32.xlu0 %v300_v42, %s927_s25 }
  0xad   :  { %280 = vrot.lane.b32.xlu1 %v275_v45, %s928_s26  ;;  %322 = vrot.lane.b32.xlu0 %v319_v47, %s927_s25 }
  0xb1   :  { %201 = vrot.lane.b32.xlu1 %v196_v51, %s924_s3  ;;  %256 = vrot.lane.b32.xlu0 %v254_v2, %s928_s26 }
  0xb5   :  { %222 = vrot.lane.b32.xlu1 %v217_v55, %s924_s3  ;;  %58 = vrot.lane.b32.xlu0 %v55_v56, %s923_s0 }
  0xb9   :  { %384 = vrot.lane.b32.xlu1 %v381_v8, %s926_s24  ;;  %79 = vrot.lane.b32.xlu0 %v76_v57, %s923_s0 }
  0xbd   :  { %170 = vrot.lane.b32.xlu1 %v165_v46, %s925_s23  ;;  %152 = vrot.lane.b32.xlu0 %v149_v53, %s925_s23 }
  0xc1   :  { %276 = vrot.lane.b32.xlu1 %v274_v58, %s928_s26  ;;  %172 = vrot.lane.b32.xlu0 %v169_v59, %s925_s23 }
  0xc5   :  { %218 = vrot.lane.b32.xlu1 %v216_v41, %s924_s3  ;;  %197 = vrot.lane.b32.xlu0 %v195_v24, %s924_s3 }
  0xc9   :  { %583 = vrot.lane.b32.xlu1 %v578_v3, %s928_s26  ;;  %657 = vrot.lane.b32.xlu0 %v652_v4, %s926_s24 }
  0xcd   :  { %603 = vrot.lane.b32.xlu1 %v598_v7, %s928_s26  ;;  %677 = vrot.lane.b32.xlu0 %v672_v9, %s926_s24 }
  0xf3   :  { %v406_v10 = vpop.permute.xlu1 %405  ;;  %v1145_v11 = vpop.permute.xlu0 %386 }
  0xf7   :  { %v306_v12 = vpop.permute.xlu1 %305  ;;  %v1147_v13 = vpop.permute.xlu0 %382 }
  0xfb   :  { %v325_v14 = vpop.permute.xlu1 %324  ;;  %v259_v32 = vpop.permute.xlu0 %258 }
  0xff   :  { %v61_v15 = vpop.permute.xlu1 %60  ;;  %v1149_v31 = vpop.permute.xlu0 %278 }
 0x103   :  { %v1151_v16 = vpop.permute.xlu1 %81  ;;  %v302_v17 = vpop.permute.xlu0 %301 }
 0x107   :  { %v1153_v18 = vpop.permute.xlu1 %154  ;;  %v1155_v19 = vpop.permute.xlu0 %199 }
 0x10b   :  { %v1157_v20 = vpop.permute.xlu1 %174  ;;  %v1159_v21 = vpop.permute.xlu0 %220 }
 0x10f   :  { %v402_v23 = vpop.permute.xlu1 %401  ;;  %v57_v25 = vpop.permute.xlu0 %56 }
 0x113   :  { %v321_v26 = vpop.permute.xlu1 %320  ;;  %v151_v27 = vpop.permute.xlu0 %150 }
 0x117   :  { %v78_v28 = vpop.permute.xlu1 %77  ;;  %v404_v29 = vpop.permute.xlu0 %403 }
 0x118   :  { %v407_v30 = vsel %vm47_vm6, %v402_v23, %v404_v29  ;;  %v408_v33 = vsel %vm47_vm6, %v404_v29, %v406_v10 }
 0x119   :  { %411 = vst [vmem:[#allocation3 + $0x70] sm:$0xf] %v407_v30  ;;  %412 = vst [vmem:[#allocation3 + $0x90] sm:$0xf] %v408_v33 }
 0x11b   :  { %v261_v34 = vpop.permute.xlu1 %260  ;;  %v304_v36 = vpop.permute.xlu0 %303 }
 0x11c   :  { %v263_v37 = vsel %vm187_vm4, %v259_v32, %v261_v34  ;;  %v307_v38 = vsel %vm141_vm7, %v302_v17, %v304_v36  ;;  %v308_v39 = vsel %vm141_vm7, %v304_v36, %v306_v12 }
 0x11d   :  { %267 = vst [vmem:[#allocation3 + $0x88] sm:$0xf0] %v263_v37  ;;  %311 = vst [vmem:[#allocation3 + $0x58] sm:$0xf] %v307_v38 }
 0x11e   :  { %312 = vst [vmem:[#allocation3 + $0x10] sm:$0xf] %v308_v39 }
 0x11f   :  { %v281_v42 = vpop.permute.xlu1 %280  ;;  %v323_v43 = vpop.permute.xlu0 %322 }
 0x120   :  { %v283_v22 = vsel %vm187_vm4, %v1149_v31, %v281_v42  ;;  %v326_v44 = vsel %vm141_vm7, %v321_v26, %v323_v43  ;;  %v327_v45 = vsel %vm141_vm7, %v323_v43, %v325_v14  ;;  %v433_v47 = vld [vmem:[#allocation3 + $0x90] sm:$0xf] }
 0x121   :  { %v432_v48 = vld [vmem:[#allocation3 + $0x70] sm:$0xf]  ;;  %287 = vst [vmem:[#allocation3 + $0x40] sm:$0xf0] %v283_v22  ;;  %330 = vst [vmem:[#allocation3 + $0x98] sm:$0xf] %v326_v44  ;;  %v445_v49 = vpack.c.bf16 %v433_v47, %v433_v47 }
 0x122   :  { %331 = vst [vmem:[#allocation3 + $0x60] sm:$0xf] %v327_v45  ;;  %v444_v50 = vpack.c.bf16 %v432_v48, %v432_v48  ;;  %v413_v48 = vld [vmem:[%s1251_s1] sm:$0x3] }
 0x123   :  { %v202_v51 = vpop.permute.xlu1 %201  ;;  %865 = vmatprep.subr.msk.bf16.mxu1 %vm450_vm8, %v445_v49  ;;  %v257_v2 = vpop.permute.xlu0 %256  ;;  %v612_v49 = vld [vmem:[#allocation2 + $0xc] sm:$0xf] }
 0x124   :  { %v458_v52 = vsel %vm450_vm8, %v444_v50, 0  ;;  %v205_v55 = vsel %vm203_vm1, %v1155_v19, %v202_v51  ;;  %v262_v56 = vsel %vm187_vm4, %v257_v2, %v259_v32  ;;  %v423_v10 = vld [vmem:[#allocation3 + $0x88] sm:$0xff]  ;;  %v426_v29 = vld [vmem:[#allocation3 + $0x58] sm:$0xff] }
 0x125   :  { %515 = vmatpush1.bf16.msra.mxu1 %v458_v52  ;;  %209 = vst [vmem:[#allocation3 + $0x68] sm:$0xf0] %v205_v55  ;;  %266 = vst [vmem:[#allocation3 + $0x8] sm:$0xf0] %v262_v56  ;;  %v629_v50 = vld [vmem:[#allocation2 + $0x1c] sm:$0xf] }
 0x126   :  { %v885_v51 = vpack.i.bf16 %v629_v50, %v612_v49 }
 0x127   :  { %v223_v8 = vpop.permute.xlu1 %222  ;;  %v59_v57 = vpop.permute.xlu0 %58 }
 0x128   :  { %v225_v46 = vsel %vm203_vm1, %v1159_v21, %v223_v8  ;;  %v63_v53 = vsel %vm62_vm0, %v57_v25, %v59_v57  ;;  %v64_v58 = vsel %vm62_vm0, %v59_v57, %v61_v15  ;;  %v425_v59 = vld [vmem:[#allocation3 + $0x40] sm:$0xff]  ;;  %v427_v15 = vld [vmem:[#allocation3 + $0x10] sm:$0xff]  ;;  %v428_v36 = vld [vmem:[#allocation3 + $0x98] sm:$0xff]  ;;  %886 = vrot.lane.b32.xlu1 %v885_v51, %s929_s27 }
 0x129   :  { %v429_v60 = vld [vmem:[#allocation3 + $0x60] sm:$0xff]  ;;  %229 = vst [vmem:[#allocation3 + $0x80] sm:$0xf0] %v225_v46  ;;  %67 = vst [vmem:[#allocation3] sm:$0xf] %v63_v53 }
 0x12a   :  { %68 = vst [vmem:[#allocation3 + $0x38] sm:$0xf] %v64_v58  ;;  %v441_v61 = vpack.c.bf16 %v429_v60, %v425_v59 }
 0x12b   :  { %v385_v41 = vpop.permute.xlu1 %384  ;;  %v80_v24 = vpop.permute.xlu0 %79 }
 0x12c   :  { %516 = vmatprep.subr.bf16.mxu1 %v441_v61  ;;  %v388_v62 = vsel %vm47_vm6, %v1147_v13, %v385_v41  ;;  %v389_v63 = vsel %vm47_vm6, %v385_v41, %v1145_v11  ;;  %v83_v0 = vsel %vm62_vm0, %v78_v28, %v80_v24  ;;  %v84_v1 = vsel %vm62_vm0, %v80_v24, %v1151_v16  ;;  %v422_v26 = vld [vmem:[#allocation3 + $0x8] sm:$0xff] }
 0x12d   :  { %392 = vst [vmem:[#allocation3 + $0x20] sm:$0xf] %v388_v62  ;;  %393 = vst [vmem:[#allocation3 + $0x48] sm:$0xf] %v389_v63  ;;  %v438_v30 = vpack.c.bf16 %v426_v29, %v422_v26 }
 0x12e   :  { %87 = vst [vmem:[#allocation3 + $0x50] sm:$0xf] %v83_v0  ;;  %88 = vst [vmem:[#allocation3 + $0x18] sm:$0xf] %v84_v1 }
 0x12f   :  { %v171_v3 = vpop.permute.xlu1 %170  ;;  %v153_v4 = vpop.permute.xlu0 %152 }
 0x130   :  { %v157_v5 = vsel %vm156_vm2, %v151_v27, %v153_v4  ;;  %v158_v6 = vsel %vm156_vm2, %v153_v4, %v1153_v18  ;;  %v414_v43 = vld [vmem:[#allocation3] sm:$0xff] }
 0x131   :  { %161 = vst [vmem:[#allocation3 + $0x30] sm:$0xf] %v157_v5  ;;  %162 = vst [vmem:[#allocation3 + $0x68] sm:$0xf] %v158_v6  ;;  %v415_v33 = vld [vmem:[#allocation3 + $0x38] sm:$0xff] }
 0x133   :  { %v277_v7 = vpop.permute.xlu1 %276  ;;  %v173_v9 = vpop.permute.xlu0 %172 }
 0x134   :  { %v282_v11 = vsel %vm187_vm4, %v277_v7, %v1149_v31  ;;  %v176_v12 = vsel %vm156_vm2, %v171_v3, %v173_v9  ;;  %v177_v13 = vsel %vm156_vm2, %v173_v9, %v1157_v20  ;;  %v431_v14 = vld [vmem:[#allocation3 + $0x48] sm:$0xf]  ;;  %v430_v32 = vld [vmem:[#allocation3 + $0x20] sm:$0xf]  ;;  %v439_v31 = vpack.c.bf16 %v427_v15, %v423_v10 }
 0x135   :  { %286 = vst [vmem:[#allocation3 + $0x28] sm:$0xf0] %v282_v11  ;;  %180 = vst [vmem:[#allocation3 + $0x78] sm:$0xf] %v176_v12  ;;  %v443_v16 = vpack.c.bf16 %v431_v14, %v431_v14  ;;  %v442_v17 = vpack.c.bf16 %v430_v32, %v430_v32  ;;  %v417_v38 = vld [vmem:[#allocation3 + $0x18] sm:$0xff]  ;;  %v416_v22 = vld [vmem:[#allocation3 + $0x50] sm:$0xff] }
 0x136   :  { %181 = vst [vmem:[#allocation3 + $0x80] sm:$0xf] %v177_v13 }
 0x137   :  { %v219_v18 = vpop.permute.xlu1 %218  ;;  %863 = vmatprep.subr.msk.bf16.mxu0 %vm450_vm8, %v443_v16  ;;  %v198_v23 = vpop.permute.xlu0 %197  ;;  %v452_v25 = vsel %vm450_vm8, %v442_v17, 0 }
 0x138   :  { %v224_v27 = vsel %vm203_vm1, %v219_v18, %v1159_v21  ;;  %v204_v20 = vsel %vm203_vm1, %v198_v23, %v1155_v19  ;;  %474 = vmatpush1.bf16.msra.mxu0 %v452_v25  ;;  %v419_v28 = vld [vmem:[#allocation3 + $0x68] sm:$0xff] }
 0x139   :  { %228 = vst [vmem:[#allocation3 + $0x78] sm:$0xf0] %v224_v27  ;;  %208 = vst [vmem:[#allocation3 + $0x30] sm:$0xf0] %v204_v20  ;;  %475 = vmatprep.subr.bf16.mxu0 %v439_v31  ;;  %v435_v34 = vpack.c.bf16 %v419_v28, %v415_v33 }
 0x13b   :  { %v658_v9 = vpop.permute.xlu0 %657 }
 0x13c   :  { %476 = vmatpush1.bf16.msra.mxu0 %v438_v30  ;;  %v424_v37 = vld [vmem:[#allocation3 + $0x28] sm:$0xff] }
 0x13d   :  { %v421_v39 = vld [vmem:[#allocation3 + $0x80] sm:$0xff]  ;;  %477 = vmatprep.subr.bf16.mxu0 %v435_v34  ;;  %v440_v42 = vpack.c.bf16 %v428_v36, %v424_v37 }
 0x13e   :  { %v437_v21 = vpack.c.bf16 %v421_v39, %v417_v38 }
 0x13f   :  { %517 = vmatpush1.bf16.msra.mxu1 %v440_v42  ;;  %v678_v12 = vpop.permute.xlu0 %677 }
 0x140   :  { %518 = vmatprep.subr.bf16.mxu1 %v437_v21  ;;  %v418_v19 = vld [vmem:[#allocation3 + $0x30] sm:$0xff]  ;;  %v420_v44 = vld [vmem:[#allocation3 + $0x78] sm:$0xff] }
 0x141   :  { %v434_v45 = vpack.c.bf16 %v418_v19, %v414_v43  ;;  %v436_v47 = vpack.c.bf16 %v420_v44, %v416_v22 }
 0x143   :  { %478 = vmatpush1.bf16.msra.mxu0 %v434_v45  ;;  %519 = vmatpush1.bf16.msra.mxu1 %v436_v47 }
 0x146   :  { %864 = vmatmul.mubr.msk.bf16.vlgmr.msra.gmra.mxu0 %vm446_vm9, %v413_v48  ;;  %866 = vmatmul.mubr.msk.bf16.vlgmr.msra.gmra.mxu1 %vm446_vm9, %v413_v48 }
 0x147   :  { %749 = vmatprep.mubr.bf16.mxu0 %v931_v54  ;;  %802 = vmatprep.mubr.bf16.mxu1 %v931_v54 }
 0x206   :  { %v497_v2 = vpop.f32.mrf.mxu0  ;;  %v538_v52 = vpop.f32.mrf.mxu1 }
 0x207   :  { %v545_v55 = vmax.f32 %v497_v2, 0.0  ;;  %v547_v57 = vmax.f32 %v538_v52, 0.0  ;;  %v896_v52 = vld [vmem:[%s1252_s2] sm:$0xff]  }
 0x208   :  { %v499_v56 = vpop.f32.mrf.mxu0  ;;  %v540_v8 = vpop.f32.mrf.mxu1 }
 0x209   :  { %v546_v46 = vmax.f32 %v499_v56, 0.0  ;;  %v548_v53 = vmax.f32 %v540_v8, 0.0 }
 0x20a   :  { %v501_v58 = vpop.f32.mrf.mxu0  ;;  %v542_v59 = vpop.f32.mrf.mxu1 }
 0x20b   :  { %v551_v60 = vcombine.low %v545_v55, %v546_v46  ;;  %v556_v61 = vcombine.low %v547_v57, %v548_v53  ;;  %v898_v62 = vcombine.low %v548_v53, %v548_v53  ;;  %v899_v63 = vcombine.low %v546_v46, %v546_v46  ;;  %v897_v57 = vld [vmem:[%s1252_s2 + $0x8] sm:$0xff]   ;;  %s932_s2 = smov [#allocation4]  }
 0x20c   :  { %v502_v41 = vpop.f32.mrf.mxu0  ;;  %v543_v24 = vpop.f32.mrf.mxu1  ;;  %s851_s8 = sshll.u32 %s932_s2, 4  ;;  %s852_s8 = int_to_ptr.vmem [resolvable:$true] %s851_s8 }
 0x20d   :  { %553 = vst [vmem:[#allocation2 + $0x4] sm:$0xff] %v551_v60  ;;  %558 = vst [vmem:[#allocation2 + $0x14] sm:$0xff] %v556_v61  ;;  %633 = vrot.lane.b32.xlu0 %v556_v61, %s929_s27  ;;  %616 = vrot.lane.b32.xlu1 %v551_v60, %s929_s27  ;;  %v647_v0 = vmul.f32 %v551_v60, %v1021_v35  ;;  %v573_v1 = vmul.f32 %v551_v60, %v1029_v40  ;;  %s900_s9 = scalar_lea.vmem %s852_s8, 2048  ;;  %p905_p1 = scmp.lt.s32.totalorder %s852_s8, %s852_s8 }
 0x20e   :  { %563 = vst [vmem:[#allocation3] sm:$0xf] %v551_v60  ;;  %569 = vst [vmem:[#allocation3 + $0x50] sm:$0xf] %v556_v61  ;;  %v667_v3 = vmul.f32 %v556_v61, %v1021_v35  ;;  %v593_v4 = vmul.f32 %v556_v61, %v1029_v40  ;;  %v584_v40 = vpop.permute.xlu1 %583  ;;  %p901_p0 = scmp.ne.s32.totalorder %s852_s8, %s900_s9  ;;  %p906_p2 = scmp.lt.s32.totalorder %s900_s9, %s900_s9 }
 0x20f   :  { %564 = vst [vmem:[#allocation3 + $0x38] sm:$0xf] %v899_v63  ;;  %570 = vst [vmem:[#allocation3 + $0x18] sm:$0xf] %v898_v62  ;;  %v577_v5 = vcombine.low %v573_v1, %v573_v1  ;;  %v651_v6 = vcombine.low %v647_v0, %v647_v0 }
 0x210   :  { %v597_v7 = vcombine.low %v593_v4, %v593_v4  ;;  %v671_v35 = vcombine.low %v667_v3, %v667_v3  ;;  %p907_p3 = por %p906_p2, %p905_p1 }
 0x211   :  { %655 = vrot.lane.b32.xlu1 %v647_v0, %s926_s24  ;;  %581 = vrot.lane.b32.xlu0 %v573_v1, %s928_s26 }
 0x212   :  { %v604_v10 = vpop.permute.xlu1 %603  ;;  %p908_p4 = pnand %p907_p3, %p901_p0 }
 0x215   :  { %675 = vrot.lane.b32.xlu1 %v667_v3, %s926_s24  ;;  %601 = vrot.lane.b32.xlu0 %v593_v4, %s928_s26 }
 0x216   :  { %v887_v11 = vpop.permute.xlu1 %886 }
 0x217   :  { %v888_v26 = vunpack.i.l.bf16 %v887_v11  ;;  %v889_v33 = vunpack.i.h.bf16 %v887_v11 }
 0x219   :  { %618 = vrot.lane.b32.xlu0 %v899_v63, %s929_s27  ;;  %579 = vrot.lane.b32.xlu1 %v577_v5, %s928_s26 }
 0x21d   :  { %635 = vrot.lane.b32.xlu0 %v898_v62, %s929_s27  ;;  %653 = vrot.lane.b32.xlu1 %v651_v6, %s926_s24 }
 0x221   :  { %599 = vrot.lane.b32.xlu0 %v597_v7, %s928_s26 }
 0x225   :  { %673 = vrot.lane.b32.xlu0 %v671_v35, %s926_s24 }
 0x27f   :  { %v617_v13 = vpop.permute.xlu1 %616  ;;  %v634_v14 = vpop.permute.xlu0 %633 }
 0x283   :  { %v656_v32 = vpop.permute.xlu1 %655  ;;  %v582_v15 = vpop.permute.xlu0 %581 }
 0x284   :  { %v660_v16 = vsel %vm47_vm6, %v656_v32, %v658_v9  ;;  %v586_v17 = vsel %vm187_vm4, %v582_v15, %v584_v40 }
 0x285   :  { %664 = vst [vmem:[#allocation3 + $0x68] sm:$0xf0] %v660_v16  ;;  %590 = vst [vmem:[#allocation3 + $0x38] sm:$0xf0] %v586_v17 }
 0x287   :  { %v676_v18 = vpop.permute.xlu1 %675  ;;  %v602_v23 = vpop.permute.xlu0 %601 }
 0x288   :  { %v680_v25 = vsel %vm47_vm6, %v676_v18, %v678_v12  ;;  %v606_v31 = vsel %vm187_vm4, %v602_v23, %v604_v10 }
 0x289   :  { %684 = vst [vmem:[#allocation3 + $0x80] sm:$0xf0] %v680_v25  ;;  %610 = vst [vmem:[#allocation3 + $0x18] sm:$0xf0] %v606_v31 }
 0x28b   :  { %v580_v27 = vpop.permute.xlu1 %579  ;;  %v619_v20 = vpop.permute.xlu0 %618 }
 0x28c   :  { %v585_v28 = vsel %vm187_vm4, %v580_v27, %v582_v15  ;;  %v622_v29 = vsel %vm344_vm3, %v617_v13, %v619_v20  ;;  %v623_v30 = vsel %vm344_vm3, %v619_v20, %v888_v26  ;;  %v690_v43 = vld [vmem:[#allocation3 + $0x38] sm:$0xff] }
 0x28d   :  { %589 = vst [vmem:[#allocation3] sm:$0xf0] %v585_v28  ;;  %626 = vst [vmem:[#allocation3 + $0x30] sm:$0xf] %v622_v29 }
 0x28e   :  { %627 = vst [vmem:[#allocation3 + $0x68] sm:$0xf] %v623_v30 }
 0x28f   :  { %v654_v34 = vpop.permute.xlu1 %653  ;;  %v636_v36 = vpop.permute.xlu0 %635 }
 0x290   :  { %v659_v37 = vsel %vm47_vm6, %v654_v34, %v656_v32  ;;  %v639_v38 = vsel %vm344_vm3, %v634_v14, %v636_v36  ;;  %v640_v39 = vsel %vm344_vm3, %v636_v36, %v889_v33  ;;  %v692_v45 = vld [vmem:[#allocation3 + $0x18] sm:$0xff] }
 0x291   :  { %663 = vst [vmem:[#allocation3 + $0x30] sm:$0xf0] %v659_v37  ;;  %643 = vst [vmem:[#allocation3 + $0x78] sm:$0xf] %v639_v38 }
 0x292   :  { %644 = vst [vmem:[#allocation3 + $0x80] sm:$0xf] %v640_v39 }
 0x293   :  { %v600_v42 = vpop.permute.xlu0 %599 }
 0x294   :  { %v605_v21 = vsel %vm187_vm4, %v600_v42, %v602_v23  ;;  %v689_v48 = vld [vmem:[#allocation3] sm:$0xff] }
 0x295   :  { %v694_v19 = vld [vmem:[#allocation3 + $0x68] sm:$0xff]  ;;  %609 = vst [vmem:[#allocation3 + $0x50] sm:$0xf0] %v605_v21 }
 0x296   :  { %v698_v22 = vpack.c.bf16 %v694_v19, %v690_v43 }
 0x297   :  { %v674_v44 = vpop.permute.xlu0 %673 }
 0x298   :  { %731 = vmatprep.subr.bf16.mxu0 %v698_v22  ;;  %v679_v47 = vsel %vm47_vm6, %v674_v44, %v676_v18  ;;  %v693_v49 = vld [vmem:[#allocation3 + $0x30] sm:$0xff] }
 0x299   :  { %v696_v50 = vld [vmem:[#allocation3 + $0x80] sm:$0xff]  ;;  %683 = vst [vmem:[#allocation3 + $0x78] sm:$0xf0] %v679_v47  ;;  %v697_v51 = vpack.c.bf16 %v693_v49, %v689_v48 }
 0x29a   :  { %v700_v2 = vpack.c.bf16 %v696_v50, %v692_v45 }
 0x29b   :  { %732 = vmatpush1.bf16.msra.mxu0 %v697_v51 }
 0x29c   :  { %784 = vmatprep.subr.bf16.mxu1 %v700_v2  ;;  %v691_v55 = vld [vmem:[#allocation3 + $0x50] sm:$0xff] }
 0x29e   :  { %869 = vmatmul.mubr.msk.bf16.vlgmr.msra.gmra.mxu0 %vm101_vm5, %v896_v52 }
 0x29f   :  { %759 = vmatprep.mubr.bf16.mxu0 %v931_v54 }
 0x2a0   :  { %v695_v56 = vld [vmem:[#allocation3 + $0x78] sm:$0xff] }
 0x2a1   :  { %v699_v8 = vpack.c.bf16 %v695_v56, %v691_v55 }
 0x2a3   :  { %785 = vmatpush1.bf16.msra.mxu1 %v699_v8 }
 0x2a6   :  { %871 = vmatmul.mubr.msk.bf16.vlgmr.msra.gmra.mxu1 %vm101_vm5, %v896_v52  ;;  %870 = vmatmul.mubr.msk.bf16.gmra.mxu0 %vm101_vm5, %v897_v57 }
 0x2a7   :  { %812 = vmatprep.mubr.bf16.mxu1 %v931_v54 }
 0x2ae   :  { %872 = vmatmul.mubr.msk.bf16.gmra.mxu1 %vm101_vm5, %v897_v57 }
 0x35e   :  { %v751_v46 = vpop.f32.mrf.mxu0 }
 0x35f   :  { %823 = vst [vmem:[#allocation4] sm:$0xff] %v751_v46 }
 0x360   :  { %v753_v53 = vpop.f32.mrf.mxu0 }
 0x361   :  { %824 = vst [vmem:[#allocation4 + $0x8] sm:$0xff] %v753_v53 }
 0x362   :  { %v755_v58 = vpop.f32.mrf.mxu0 }
 0x363   :  { %826 = vst [vmem:[#allocation4 + $0x10] sm:$0xff] %v755_v58 }
 0x364   :  { %v757_v59 = vpop.f32.mrf.mxu0 }
 0x365   :  { %827 = vst [vmem:[#allocation4 + $0x18] sm:$0xff] %v757_v59 }
 0x366   :  { %v804_v60 = vpop.f32.mrf.mxu1  ;;  %v761_v61 = vpop.f32.mrf.mxu0 }
 0x367   :  { %835 = vst [vmem:[#allocation4 + $0x40] sm:$0xff] %v804_v60  ;;  %829 = vst [vmem:[#allocation4 + $0x20] sm:$0xff] %v761_v61 }
 0x368   :  { %v806_v41 = vpop.f32.mrf.mxu1  ;;  %v763_v24 = vpop.f32.mrf.mxu0 }
 0x369   :  { %836 = vst [vmem:[#allocation4 + $0x48] sm:$0xff] %v806_v41  ;;  %830 = vst [vmem:[#allocation4 + $0x28] sm:$0xff] %v763_v24 }
 0x36a   :  { %v808_v62 = vpop.f32.mrf.mxu1  ;;  %v765_v54 = vpop.f32.mrf.mxu0 }
 0x36b   :  { %838 = vst [vmem:[#allocation4 + $0x50] sm:$0xff] %v808_v62  ;;  %832 = vst [vmem:[#allocation4 + $0x30] sm:$0xff] %v765_v54 }
 0x36c   :  { %v810_v63 = vpop.f32.mrf.mxu1  ;;  %v767_v0 = vpop.f32.mrf.mxu0 }
 0x36d   :  { %839 = vst [vmem:[#allocation4 + $0x58] sm:$0xff] %v810_v63  ;;  %833 = vst [vmem:[#allocation4 + $0x38] sm:$0xff] %v767_v0 }
 0x36e   :  { %v814_v1 = vpop.f32.mrf.mxu1 }
 0x36f   :  { %841 = vst [vmem:[#allocation4 + $0x60] sm:$0xff] %v814_v1 }
 0x370   :  { %v816_v3 = vpop.f32.mrf.mxu1 }
 0x371   :  { %842 = vst [vmem:[#allocation4 + $0x68] sm:$0xff] %v816_v3 }
 0x372   :  { %v818_v4 = vpop.f32.mrf.mxu1 }
 0x373   :  { %844 = vst [vmem:[#allocation4 + $0x70] sm:$0xff] %v818_v4 }
 0x374   :  { %v820_v5 = vpop.f32.mrf.mxu1 }
 0x375   :  { %845 = vst [vmem:[#allocation4 + $0x78] sm:$0xff] %v820_v5 }
 0x376   :  { %911 = shalt.err (!%p908_p4)
}
 0x377   :  { %s933_s10 = smov 256  }
 0x378   :  { %857 = dma.vmem_to_hbm [thread:$0]  %s852_s8, 2048, %s1254_s4, [#allocation5], %s933_s10, %s933_s10, %s930_s28  }
 0x379   :  { %920 = dma.done.wait [#allocation5], 2048  }
 0x37a   :  { %921 = vsyncadd [#allocation5], 4294965248 }
 0x37b   :  { %861 = vsyncpa [#allocation5], 1 }

</bundles_post_ra>
